<compile_context>
chip_gen: v6e
topology: v6e:2x2x1
jax: 0.10.0
libtpu: 0.0.40
codegen_flags: <defaults>
</compile_context>

<pallas_src>
import jax
import jax.numpy as jnp
from jax.experimental import pallas as pl
from jax.experimental.pallas import tpu as pltpu

NEG_SLOPE = 0.01  # nn.LeakyReLU default negative_slope

_LAYERS = (("w_fc", "b_fc"), ("w1", "b1"), ("w2", "b2"), ("w3", "b3"),
           ("w4", "b4"), ("w5", "b5"), ("wv", "bv"))


def actor_kernel(
    x_ref,
    w_fc_ref, b_fc_ref,
    w1_ref, b1_ref,
    w2_ref, b2_ref,
    w3_ref, b3_ref,
    w4_ref, b4_ref,
    w5_ref, b5_ref,
    wv_ref, bv_ref,
    out_ref,
):
    def layer(h, w_ref, b_ref):
        # bf16 MXU matmul with f32 accumulation; bias-add + LeakyReLU kept in f32
        # (v5e has no bf16 VPU path).  maximum(y, 0.01*y) == LeakyReLU for slope<1.
        y = jnp.dot(h.astype(jnp.bfloat16), w_ref[...],
                    preferred_element_type=jnp.float32) + b_ref[...]
        return jnp.maximum(y, NEG_SLOPE * y)

    h = layer(x_ref[...], w_fc_ref, b_fc_ref)   # fc + LeakyReLU
    h = layer(h, w1_ref, b1_ref)                # value_fc1 + LeakyReLU
    h = layer(h, w2_ref, b2_ref)                # value_fc2 + LeakyReLU
    h = layer(h, w3_ref, b3_ref)                # value_fc3 + LeakyReLU
    # TODO(synk): nn.Dropout(0.2) is identity in eval mode; training-mode dropout
    # would use pltpu.prng_seed + pltpu.prng_random_bits to build the mask.
    h = layer(h, w4_ref, b4_ref)                # value_fc4 + LeakyReLU
    h = layer(h, w5_ref, b5_ref)                # value_fc5 + LeakyReLU

    # Value head (mid -> 1): VPU multiply + XLU lane reduction into a 1-lane output
    # block instead of a 128-lane-padded MXU pass.  wv_ref is a (1, mid) f32 row,
    # bv_ref a (1, 1) f32 scalar; both broadcast over the batch tile.
    v = jnp.sum(h * wv_ref[...], axis=-1, keepdims=True) + bv_ref[...]
    out_ref[...] = v.astype(out_ref.dtype)


def actor_forward(x, prep, *, tile_b=512, vmem_limit_bytes=None):
    """x: (B, obs_size) f32 or bf16; prep: prepared params (see prepare_params)."""
    B, obs = x.shape
    mid = prep["w1"].shape[0]

    # Batch tiling:
    #  * multiple of 8 rows (sublane alignment),
    #  * 512 rows/step by default for large batches (amortizes per-step overhead,
    #    feeds the MXU M dimension),
    #  * when the whole batch fits in one tile, split it into two half tiles so
    #    v7x's two TensorCores both get a "parallel" grid step.
    if B <= tile_b:
        half = -(-B // 2)
        tile_b = max(8, -(-half // 8) * 8)
    b_pad = -(-B // tile_b) * tile_b
    if b_pad != B:
        x = jnp.pad(x, ((0, b_pad - B), (0, 0)))

    args = [x]
    for wn, bn in _LAYERS:
        args += [prep[wn], prep[bn]]

    # Rough VMEM footprint: resident weights (x2 if double-buffered fallback),
    # double-buffered x/out tiles, f32 activation chain.  Raise the scoped-VMEM
    # limit only if it threatens v5e's 16 MiB default.
    if vmem_limit_bytes is None:
        w_bytes = sum(int(prep[n].size) * prep[n].dtype.itemsize
                      for pair in _LAYERS for n in pair)
        est = (2 * w_bytes
               + 2 * tile_b * obs * x.dtype.itemsize
               + 2 * tile_b * 4
               + 3 * tile_b * mid * 4)
        if est > 14 * 1024 * 1024:
            vmem_limit_bytes = min(int(est * 1.5), 100 * 1024 * 1024)

    flops = 2 * b_pad * (obs * mid + 5 * mid * mid + mid)
    bytes_accessed = (sum(int(a.size) * a.dtype.itemsize for a in args)
                      + b_pad * 4)
    cost = pl.CostEstimate(flops=flops, transcendentals=0,
                           bytes_accessed=bytes_accessed)

    def build(single_buffer_weights):
        def const_spec(shape):
            # Constant index_map -> block is resident across the whole batch grid;
            # Buffered(1) drops the pointless second buffer (halves weight VMEM).
            if single_buffer_weights:
                return pl.BlockSpec(shape, lambda i: (0, 0),
                                    pipeline_mode=pl.Buffered(1))
            return pl.BlockSpec(shape, lambda i: (0, 0))

        in_specs = [pl.BlockSpec((tile_b, obs), lambda i: (i, 0))]
        for wn, bn in _LAYERS:
            in_specs += [const_spec(prep[wn].shape), const_spec(prep[bn].shape)]

        return pl.pallas_call(
            actor_kernel,
            out_shape=jax.ShapeDtypeStruct((b_pad, 1), jnp.float32),
            grid=(b_pad // tile_b,),
            in_specs=in_specs,
            out_specs=pl.BlockSpec((tile_b, 1), lambda i: (i, 0)),
            compiler_params=pltpu.CompilerParams(
                dimension_semantics=("parallel",),
                vmem_limit_bytes=vmem_limit_bytes),
            cost_estimate=cost,
        )

    try:
        out = build(True)(*args)
    except Exception:
        # Pallas version without BlockSpec pipeline_mode / Buffered(1) support:
        # fall back to default double-buffered resident weights (still correct).
        out = build(False)(*args)
    return out[:B]


def init_actor_params(key, obs_size, mid_dim):
    """PyTorch-style init; weights stored [in, out] (y = x @ W + b)."""

    def linear_init(k, fan_in, fan_out):
        kw, kb = jax.random.split(k)
        bound = 1.0 / jnp.sqrt(jnp.float32(fan_in))
        w = jax.random.uniform(kw, (fan_in, fan_out), jnp.float32, -bound, bound)
        b = jax.random.uniform(kb, (1, fan_out), jnp.float32, -bound, bound)
        return w, b

    keys = jax.random.split(key, 7)
    params = {}
    params["w_fc"], params["b_fc"] = linear_init(keys[0], obs_size, mid_dim)
    params["w1"], params["b1"] = linear_init(keys[1], mid_dim, mid_dim)
    params["w2"], params["b2"] = linear_init(keys[2], mid_dim, mid_dim)
    params["w3"], params["b3"] = linear_init(keys[3], mid_dim, mid_dim)
    params["w4"], params["b4"] = linear_init(keys[4], mid_dim, mid_dim)
    params["w5"], params["b5"] = linear_init(keys[5], mid_dim, mid_dim)
    params["wv"], params["bv"] = linear_init(keys[6], mid_dim, 1)
    return params


def prepare_params(params):
    """Cast hidden-layer weights to bf16 (halves weight DMA), keep biases f32, and
    reshape the value head to a (1, mid) f32 row / (1, 1) f32 bias consumed by the
    in-kernel lane reduction (no 128-lane padding)."""
    prep = {}
    for name in ("w_fc", "w1", "w2", "w3", "w4", "w5"):
        prep[name] = params[name].astype(jnp.bfloat16)
    for name in ("b_fc", "b1", "b2", "b3", "b4", "b5"):
        prep[name] = params[name].astype(jnp.float32)
    prep["wv"] = params["wv"].reshape(1, -1).astype(jnp.float32)   # (1, mid)
    prep["bv"] = params["bv"].reshape(1, 1).astype(jnp.float32)    # (1, 1)
    return prep


def actor_reference_kernel_math(x, p):
    """Mirror of the kernel arithmetic (bf16 MXU inputs, f32 accum/epilogue,
    lane-reduction head) — tight-tolerance check."""
    lr = lambda t: jnp.maximum(t, NEG_SLOPE * t)

    def lin(h, w, b):
        return jnp.dot(h.astype(jnp.bfloat16), w,
                       preferred_element_type=jnp.float32) + b

    h = lr(lin(x, p["w_fc"], p["b_fc"]))
    h = lr(lin(h, p["w1"], p["b1"]))
    h = lr(lin(h, p["w2"], p["b2"]))
    h = lr(lin(h, p["w3"], p["b3"]))
    h = lr(lin(h, p["w4"], p["b4"]))
    h = lr(lin(h, p["w5"], p["b5"]))
    return jnp.sum(h * p["wv"], axis=-1, keepdims=True) + p["bv"]


def actor_reference(x, params):
    """Pure-JAX f32 reference of the PyTorch forward (eval-mode dropout)."""
    lr = lambda t: jnp.where(t > 0, t, NEG_SLOPE * t)
    h = lr(x @ params["w_fc"] + params["b_fc"])
    h = lr(h @ params["w1"] + params["b1"])
    h = lr(h @ params["w2"] + params["b2"])
    h = lr(h @ params["w3"] + params["b3"])
    # dropout(0.2): identity in eval mode
    h = lr(h @ params["w4"] + params["b4"])
    h = lr(h @ params["w5"] + params["b5"])
    return h @ params["wv"] + params["bv"]


if __name__ == "__main__":
    OBS_SIZE = 128   # obs_size
    MID_DIM = 256    # mid_dim (module default 512; multiple of 256 keeps the
                     # 2x256x256 MXUs on v6e/v7x fully fed even at demo size)
    BATCH = 16       # splits into two 8-row tiles -> both v7x TensorCores get work

    key = jax.random.PRNGKey(0)
    k_x, k_p = jax.random.split(key)
    x = jax.random.normal(k_x, (BATCH, OBS_SIZE), jnp.float32)
    params = init_actor_params(k_p, OBS_SIZE, MID_DIM)
    prep = prepare_params(params)

    out = actor_forward(x, prep)
    out = jax.block_until_ready(out)
    assert out.shape == (BATCH, 1)

    # Check against a reference that uses the same bf16 weights (tight tolerance) ...
    ref_matched = actor_reference_kernel_math(x, prep)
    assert jnp.allclose(out, ref_matched, atol=1e-2, rtol=1e-2), \
        "mismatch vs bf16-matched reference"
    # ... and against the full-f32 reference (loose tolerance for bf16 weight error).
    ref_f32 = actor_reference(x, params)
    assert jnp.allclose(out, ref_f32, atol=5e-2, rtol=5e-2), \
        "mismatch vs f32 reference"

    print("KERNEL_OK")
</pallas_src>

<mosaic_0001>
module attributes {stable_mosaic.version = 11 : i64} {
  func.func @actor_kernel(%arg0: i32, %arg1: memref<8x128xf32, #tpu.memory_space<vmem>>, %arg2: memref<128x256xbf16, #tpu.memory_space<vmem>>, %arg3: memref<1x256xf32, #tpu.memory_space<vmem>>, %arg4: memref<256x256xbf16, #tpu.memory_space<vmem>>, %arg5: memref<1x256xf32, #tpu.memory_space<vmem>>, %arg6: memref<256x256xbf16, #tpu.memory_space<vmem>>, %arg7: memref<1x256xf32, #tpu.memory_space<vmem>>, %arg8: memref<256x256xbf16, #tpu.memory_space<vmem>>, %arg9: memref<1x256xf32, #tpu.memory_space<vmem>>, %arg10: memref<256x256xbf16, #tpu.memory_space<vmem>>, %arg11: memref<1x256xf32, #tpu.memory_space<vmem>>, %arg12: memref<256x256xbf16, #tpu.memory_space<vmem>>, %arg13: memref<1x256xf32, #tpu.memory_space<vmem>>, %arg14: memref<1x256xf32, #tpu.memory_space<vmem>>, %arg15: memref<1x1xf32, #tpu.memory_space<vmem>>, %arg16: memref<8x1xf32, #tpu.memory_space<vmem>>) attributes {dimension_semantics = [#tpu.dimension_semantics<parallel>], iteration_bounds = array<i64: 2>, scalar_prefetch = 0 : i64, scratch_operands = 0 : i64, tpu.core_type = #tpu.core_type<tc>, window_params = [{transform_indices = @transform_0, window_bounds = array<i64: 8, 128>}, {pipeline_mode = #tpu.pipeline_mode<synchronous>, transform_indices = @transform_1, window_bounds = array<i64: 128, 256>}, {pipeline_mode = #tpu.pipeline_mode<synchronous>, transform_indices = @transform_2, window_bounds = array<i64: 1, 256>}, {pipeline_mode = #tpu.pipeline_mode<synchronous>, transform_indices = @transform_3, window_bounds = array<i64: 256, 256>}, {pipeline_mode = #tpu.pipeline_mode<synchronous>, transform_indices = @transform_4, window_bounds = array<i64: 1, 256>}, {pipeline_mode = #tpu.pipeline_mode<synchronous>, transform_indices = @transform_5, window_bounds = array<i64: 256, 256>}, {pipeline_mode = #tpu.pipeline_mode<synchronous>, transform_indices = @transform_6, window_bounds = array<i64: 1, 256>}, {pipeline_mode = #tpu.pipeline_mode<synchronous>, transform_indices = @transform_7, window_bounds = array<i64: 256, 256>}, {pipeline_mode = #tpu.pipeline_mode<synchronous>, transform_indices = @transform_8, window_bounds = array<i64: 1, 256>}, {pipeline_mode = #tpu.pipeline_mode<synchronous>, transform_indices = @transform_9, window_bounds = array<i64: 256, 256>}, {pipeline_mode = #tpu.pipeline_mode<synchronous>, transform_indices = @transform_10, window_bounds = array<i64: 1, 256>}, {pipeline_mode = #tpu.pipeline_mode<synchronous>, transform_indices = @transform_11, window_bounds = array<i64: 256, 256>}, {pipeline_mode = #tpu.pipeline_mode<synchronous>, transform_indices = @transform_12, window_bounds = array<i64: 1, 256>}, {pipeline_mode = #tpu.pipeline_mode<synchronous>, transform_indices = @transform_13, window_bounds = array<i64: 1, 256>}, {pipeline_mode = #tpu.pipeline_mode<synchronous>, transform_indices = @transform_14, window_bounds = array<i64: 1, 1>}, {transform_indices = @transform_15, window_bounds = array<i64: 8, 1>}]} {
    %c0 = arith.constant 0 : index
    %c0_0 = arith.constant 0 : index
    %0 = vector.load %arg1[%c0, %c0_0] : memref<8x128xf32, #tpu.memory_space<vmem>>, vector<8x128xf32>
    %1 = arith.truncf %0 : vector<8x128xf32> to vector<8x128xbf16>
    %c0_1 = arith.constant 0 : index
    %c0_2 = arith.constant 0 : index
    %2 = vector.load %arg2[%c0_1, %c0_2] : memref<128x256xbf16, #tpu.memory_space<vmem>>, vector<128x256xbf16>
    %cst = arith.constant dense<0.000000e+00> : vector<8x256xf32>
    %3 = tpu.matmul %1, %2, %cst {dimension_numbers = #tpu.dot_dimension_numbers<[1], [0], [0], [1], [0, 0, 1, 1], [], []>} : vector<8x128xbf16>, vector<128x256xbf16>, vector<8x256xf32> -> vector<8x256xf32>
    %c0_3 = arith.constant 0 : index
    %c0_4 = arith.constant 0 : index
    %4 = vector.load %arg3[%c0_3, %c0_4] : memref<1x256xf32, #tpu.memory_space<vmem>>, vector<1x256xf32>
    %5 = vector.broadcast %4 : vector<1x256xf32> to vector<8x256xf32>
    %6 = arith.addf %3, %5 : vector<8x256xf32>
    %cst_5 = arith.constant 0.00999999977 : f32
    %7 = vector.broadcast %cst_5 : f32 to vector<8x256xf32>
    %8 = arith.mulf %7, %6 : vector<8x256xf32>
    %9 = arith.maximumf %6, %8 : vector<8x256xf32>
    %10 = arith.truncf %9 : vector<8x256xf32> to vector<8x256xbf16>
    %c0_6 = arith.constant 0 : index
    %c0_7 = arith.constant 0 : index
    %11 = vector.load %arg4[%c0_6, %c0_7] : memref<256x256xbf16, #tpu.memory_space<vmem>>, vector<256x256xbf16>
    %cst_8 = arith.constant dense<0.000000e+00> : vector<8x256xf32>
    %12 = tpu.matmul %10, %11, %cst_8 {dimension_numbers = #tpu.dot_dimension_numbers<[1], [0], [0], [1], [0, 0, 1, 1], [], []>} : vector<8x256xbf16>, vector<256x256xbf16>, vector<8x256xf32> -> vector<8x256xf32>
    %c0_9 = arith.constant 0 : index
    %c0_10 = arith.constant 0 : index
    %13 = vector.load %arg5[%c0_9, %c0_10] : memref<1x256xf32, #tpu.memory_space<vmem>>, vector<1x256xf32>
    %14 = vector.broadcast %13 : vector<1x256xf32> to vector<8x256xf32>
    %15 = arith.addf %12, %14 : vector<8x256xf32>
    %cst_11 = arith.constant 0.00999999977 : f32
    %16 = vector.broadcast %cst_11 : f32 to vector<8x256xf32>
    %17 = arith.mulf %16, %15 : vector<8x256xf32>
    %18 = arith.maximumf %15, %17 : vector<8x256xf32>
    %19 = arith.truncf %18 : vector<8x256xf32> to vector<8x256xbf16>
    %c0_12 = arith.constant 0 : index
    %c0_13 = arith.constant 0 : index
    %20 = vector.load %arg6[%c0_12, %c0_13] : memref<256x256xbf16, #tpu.memory_space<vmem>>, vector<256x256xbf16>
    %cst_14 = arith.constant dense<0.000000e+00> : vector<8x256xf32>
    %21 = tpu.matmul %19, %20, %cst_14 {dimension_numbers = #tpu.dot_dimension_numbers<[1], [0], [0], [1], [0, 0, 1, 1], [], []>} : vector<8x256xbf16>, vector<256x256xbf16>, vector<8x256xf32> -> vector<8x256xf32>
    %c0_15 = arith.constant 0 : index
    %c0_16 = arith.constant 0 : index
    %22 = vector.load %arg7[%c0_15, %c0_16] : memref<1x256xf32, #tpu.memory_space<vmem>>, vector<1x256xf32>
    %23 = vector.broadcast %22 : vector<1x256xf32> to vector<8x256xf32>
    %24 = arith.addf %21, %23 : vector<8x256xf32>
    %cst_17 = arith.constant 0.00999999977 : f32
    %25 = vector.broadcast %cst_17 : f32 to vector<8x256xf32>
    %26 = arith.mulf %25, %24 : vector<8x256xf32>
    %27 = arith.maximumf %24, %26 : vector<8x256xf32>
    %28 = arith.truncf %27 : vector<8x256xf32> to vector<8x256xbf16>
    %c0_18 = arith.constant 0 : index
    %c0_19 = arith.constant 0 : index
    %29 = vector.load %arg8[%c0_18, %c0_19] : memref<256x256xbf16, #tpu.memory_space<vmem>>, vector<256x256xbf16>
    %cst_20 = arith.constant dense<0.000000e+00> : vector<8x256xf32>
    %30 = tpu.matmul %28, %29, %cst_20 {dimension_numbers = #tpu.dot_dimension_numbers<[1], [0], [0], [1], [0, 0, 1, 1], [], []>} : vector<8x256xbf16>, vector<256x256xbf16>, vector<8x256xf32> -> vector<8x256xf32>
    %c0_21 = arith.constant 0 : index
    %c0_22 = arith.constant 0 : index
    %31 = vector.load %arg9[%c0_21, %c0_22] : memref<1x256xf32, #tpu.memory_space<vmem>>, vector<1x256xf32>
    %32 = vector.broadcast %31 : vector<1x256xf32> to vector<8x256xf32>
    %33 = arith.addf %30, %32 : vector<8x256xf32>
    %cst_23 = arith.constant 0.00999999977 : f32
    %34 = vector.broadcast %cst_23 : f32 to vector<8x256xf32>
    %35 = arith.mulf %34, %33 : vector<8x256xf32>
    %36 = arith.maximumf %33, %35 : vector<8x256xf32>
    %37 = arith.truncf %36 : vector<8x256xf32> to vector<8x256xbf16>
    %c0_24 = arith.constant 0 : index
    %c0_25 = arith.constant 0 : index
    %38 = vector.load %arg10[%c0_24, %c0_25] : memref<256x256xbf16, #tpu.memory_space<vmem>>, vector<256x256xbf16>
    %cst_26 = arith.constant dense<0.000000e+00> : vector<8x256xf32>
    %39 = tpu.matmul %37, %38, %cst_26 {dimension_numbers = #tpu.dot_dimension_numbers<[1], [0], [0], [1], [0, 0, 1, 1], [], []>} : vector<8x256xbf16>, vector<256x256xbf16>, vector<8x256xf32> -> vector<8x256xf32>
    %c0_27 = arith.constant 0 : index
    %c0_28 = arith.constant 0 : index
    %40 = vector.load %arg11[%c0_27, %c0_28] : memref<1x256xf32, #tpu.memory_space<vmem>>, vector<1x256xf32>
    %41 = vector.broadcast %40 : vector<1x256xf32> to vector<8x256xf32>
    %42 = arith.addf %39, %41 : vector<8x256xf32>
    %cst_29 = arith.constant 0.00999999977 : f32
    %43 = vector.broadcast %cst_29 : f32 to vector<8x256xf32>
    %44 = arith.mulf %43, %42 : vector<8x256xf32>
    %45 = arith.maximumf %42, %44 : vector<8x256xf32>
    %46 = arith.truncf %45 : vector<8x256xf32> to vector<8x256xbf16>
    %c0_30 = arith.constant 0 : index
    %c0_31 = arith.constant 0 : index
    %47 = vector.load %arg12[%c0_30, %c0_31] : memref<256x256xbf16, #tpu.memory_space<vmem>>, vector<256x256xbf16>
    %cst_32 = arith.constant dense<0.000000e+00> : vector<8x256xf32>
    %48 = tpu.matmul %46, %47, %cst_32 {dimension_numbers = #tpu.dot_dimension_numbers<[1], [0], [0], [1], [0, 0, 1, 1], [], []>} : vector<8x256xbf16>, vector<256x256xbf16>, vector<8x256xf32> -> vector<8x256xf32>
    %c0_33 = arith.constant 0 : index
    %c0_34 = arith.constant 0 : index
    %49 = vector.load %arg13[%c0_33, %c0_34] : memref<1x256xf32, #tpu.memory_space<vmem>>, vector<1x256xf32>
    %50 = vector.broadcast %49 : vector<1x256xf32> to vector<8x256xf32>
    %51 = arith.addf %48, %50 : vector<8x256xf32>
    %cst_35 = arith.constant 0.00999999977 : f32
    %52 = vector.broadcast %cst_35 : f32 to vector<8x256xf32>
    %53 = arith.mulf %52, %51 : vector<8x256xf32>
    %54 = arith.maximumf %51, %53 : vector<8x256xf32>
    %c0_36 = arith.constant 0 : index
    %c0_37 = arith.constant 0 : index
    %55 = vector.load %arg14[%c0_36, %c0_37] : memref<1x256xf32, #tpu.memory_space<vmem>>, vector<1x256xf32>
    %56 = vector.broadcast %55 : vector<1x256xf32> to vector<8x256xf32>
    %57 = arith.mulf %54, %56 : vector<8x256xf32>
    %cst_38 = arith.constant dense<0.000000e+00> : vector<8xf32>
    %58 = vector.multi_reduction <add>, %57, %cst_38 [1] : vector<8x256xf32> to vector<8xf32>
    %59 = vector.shape_cast %58 : vector<8xf32> to vector<8x1xf32>
    %c0_39 = arith.constant 0 : index
    %c0_40 = arith.constant 0 : index
    %60 = vector.load %arg15[%c0_39, %c0_40] : memref<1x1xf32, #tpu.memory_space<vmem>>, vector<1x1xf32>
    %61 = vector.broadcast %60 : vector<1x1xf32> to vector<8x1xf32>
    %62 = arith.addf %59, %61 : vector<8x1xf32>
    %c0_41 = arith.constant 0 : index
    %c0_42 = arith.constant 0 : index
    %63 = vector.load %arg16[%c0_41, %c0_42] : memref<8x1xf32, #tpu.memory_space<vmem>>, vector<8x1xf32>
    tpu.vector_store %arg16[%c0_41, %c0_42], %62 {strides = array<i32>} : memref<8x1xf32, #tpu.memory_space<vmem>>, vector<8x1xf32>,
    return
  }
  func.func @transform_0(%arg0: i32) -> (i32, i32) {
    %c0_i32 = arith.constant 0 : i32
    %c0_i32_0 = arith.constant 0 : i32
    return %arg0, %c0_i32 : i32, i32
  }
  func.func @transform_1(%arg0: i32) -> (i32, i32) {
    %c0_i32 = arith.constant 0 : i32
    %c0_i32_0 = arith.constant 0 : i32
    %c0_i32_1 = arith.constant 0 : i32
    return %c0_i32, %c0_i32_0 : i32, i32
  }
  func.func @transform_2(%arg0: i32) -> (i32, i32) {
    %c0_i32 = arith.constant 0 : i32
    %c0_i32_0 = arith.constant 0 : i32
    %c0_i32_1 = arith.constant 0 : i32
    return %c0_i32, %c0_i32_0 : i32, i32
  }
  func.func @transform_3(%arg0: i32) -> (i32, i32) {
    %c0_i32 = arith.constant 0 : i32
    %c0_i32_0 = arith.constant 0 : i32
    %c0_i32_1 = arith.constant 0 : i32
    return %c0_i32, %c0_i32_0 : i32, i32
  }
  func.func @transform_4(%arg0: i32) -> (i32, i32) {
    %c0_i32 = arith.constant 0 : i32
    %c0_i32_0 = arith.constant 0 : i32
    %c0_i32_1 = arith.constant 0 : i32
    return %c0_i32, %c0_i32_0 : i32, i32
  }
  func.func @transform_5(%arg0: i32) -> (i32, i32) {
    %c0_i32 = arith.constant 0 : i32
    %c0_i32_0 = arith.constant 0 : i32
    %c0_i32_1 = arith.constant 0 : i32
    return %c0_i32, %c0_i32_0 : i32, i32
  }
  func.func @transform_6(%arg0: i32) -> (i32, i32) {
    %c0_i32 = arith.constant 0 : i32
    %c0_i32_0 = arith.constant 0 : i32
    %c0_i32_1 = arith.constant 0 : i32
    return %c0_i32, %c0_i32_0 : i32, i32
  }
  func.func @transform_7(%arg0: i32) -> (i32, i32) {
    %c0_i32 = arith.constant 0 : i32
    %c0_i32_0 = arith.constant 0 : i32
    %c0_i32_1 = arith.constant 0 : i32
    return %c0_i32, %c0_i32_0 : i32, i32
  }
  func.func @transform_8(%arg0: i32) -> (i32, i32) {
    %c0_i32 = arith.constant 0 : i32
    %c0_i32_0 = arith.constant 0 : i32
    %c0_i32_1 = arith.constant 0 : i32
    return %c0_i32, %c0_i32_0 : i32, i32
  }
  func.func @transform_9(%arg0: i32) -> (i32, i32) {
    %c0_i32 = arith.constant 0 : i32
    %c0_i32_0 = arith.constant 0 : i32
    %c0_i32_1 = arith.constant 0 : i32
    return %c0_i32, %c0_i32_0 : i32, i32
  }
  func.func @transform_10(%arg0: i32) -> (i32, i32) {
    %c0_i32 = arith.constant 0 : i32
    %c0_i32_0 = arith.constant 0 : i32
    %c0_i32_1 = arith.constant 0 : i32
    return %c0_i32, %c0_i32_0 : i32, i32
  }
  func.func @transform_11(%arg0: i32) -> (i32, i32) {
    %c0_i32 = arith.constant 0 : i32
    %c0_i32_0 = arith.constant 0 : i32
    %c0_i32_1 = arith.constant 0 : i32
    return %c0_i32, %c0_i32_0 : i32, i32
  }
  func.func @transform_12(%arg0: i32) -> (i32, i32) {
    %c0_i32 = arith.constant 0 : i32
    %c0_i32_0 = arith.constant 0 : i32
    %c0_i32_1 = arith.constant 0 : i32
    return %c0_i32, %c0_i32_0 : i32, i32
  }
  func.func @transform_13(%arg0: i32) -> (i32, i32) {
    %c0_i32 = arith.constant 0 : i32
    %c0_i32_0 = arith.constant 0 : i32
    %c0_i32_1 = arith.constant 0 : i32
    return %c0_i32, %c0_i32_0 : i32, i32
  }
  func.func @transform_14(%arg0: i32) -> (i32, i32) {
    %c0_i32 = arith.constant 0 : i32
    %c0_i32_0 = arith.constant 0 : i32
    %c0_i32_1 = arith.constant 0 : i32
    return %c0_i32, %c0_i32_0 : i32, i32
  }
  func.func @transform_15(%arg0: i32) -> (i32, i32) {
    %c0_i32 = arith.constant 0 : i32
    %c0_i32_0 = arith.constant 0 : i32
    return %arg0, %c0_i32 : i32, i32
  }
}

module attributes {stable_mosaic.version = 11 : i64} {
  func.func @actor_kernel(%arg0: i32, %arg1: memref<8x128xf32, #tpu.memory_space<vmem>>, %arg2: memref<128x256xbf16, #tpu.memory_space<vmem>>, %arg3: memref<1x256xf32, #tpu.memory_space<vmem>>, %arg4: memref<256x256xbf16, #tpu.memory_space<vmem>>, %arg5: memref<1x256xf32, #tpu.memory_space<vmem>>, %arg6: memref<256x256xbf16, #tpu.memory_space<vmem>>, %arg7: memref<1x256xf32, #tpu.memory_space<vmem>>, %arg8: memref<256x256xbf16, #tpu.memory_space<vmem>>, %arg9: memref<1x256xf32, #tpu.memory_space<vmem>>, %arg10: memref<256x256xbf16, #tpu.memory_space<vmem>>, %arg11: memref<1x256xf32, #tpu.memory_space<vmem>>, %arg12: memref<256x256xbf16, #tpu.memory_space<vmem>>, %arg13: memref<1x256xf32, #tpu.memory_space<vmem>>, %arg14: memref<1x256xf32, #tpu.memory_space<vmem>>, %arg15: memref<1x1xf32, #tpu.memory_space<vmem>>, %arg16: memref<8x1xf32, #tpu.memory_space<vmem>>) attributes {dimension_semantics = [#tpu.dimension_semantics<parallel>], iteration_bounds = array<i64: 2>, scalar_prefetch = 0 : i64, scratch_operands = 0 : i64, tpu.core_type = #tpu.core_type<tc>, window_params = [{transform_indices = @transform_0, window_bounds = array<i64: 8, 128>}, {pipeline_mode = #tpu.pipeline_mode<synchronous>, transform_indices = @transform_1, window_bounds = array<i64: 128, 256>}, {pipeline_mode = #tpu.pipeline_mode<synchronous>, transform_indices = @transform_2, window_bounds = array<i64: 1, 256>}, {pipeline_mode = #tpu.pipeline_mode<synchronous>, transform_indices = @transform_3, window_bounds = array<i64: 256, 256>}, {pipeline_mode = #tpu.pipeline_mode<synchronous>, transform_indices = @transform_4, window_bounds = array<i64: 1, 256>}, {pipeline_mode = #tpu.pipeline_mode<synchronous>, transform_indices = @transform_5, window_bounds = array<i64: 256, 256>}, {pipeline_mode = #tpu.pipeline_mode<synchronous>, transform_indices = @transform_6, window_bounds = array<i64: 1, 256>}, {pipeline_mode = #tpu.pipeline_mode<synchronous>, transform_indices = @transform_7, window_bounds = array<i64: 256, 256>}, {pipeline_mode = #tpu.pipeline_mode<synchronous>, transform_indices = @transform_8, window_bounds = array<i64: 1, 256>}, {pipeline_mode = #tpu.pipeline_mode<synchronous>, transform_indices = @transform_9, window_bounds = array<i64: 256, 256>}, {pipeline_mode = #tpu.pipeline_mode<synchronous>, transform_indices = @transform_10, window_bounds = array<i64: 1, 256>}, {pipeline_mode = #tpu.pipeline_mode<synchronous>, transform_indices = @transform_11, window_bounds = array<i64: 256, 256>}, {pipeline_mode = #tpu.pipeline_mode<synchronous>, transform_indices = @transform_12, window_bounds = array<i64: 1, 256>}, {pipeline_mode = #tpu.pipeline_mode<synchronous>, transform_indices = @transform_13, window_bounds = array<i64: 1, 256>}, {pipeline_mode = #tpu.pipeline_mode<synchronous>, transform_indices = @transform_14, window_bounds = array<i64: 1, 1>}, {transform_indices = @transform_15, window_bounds = array<i64: 8, 1>}]} {
    %c0 = arith.constant 0 : index
    %c0_0 = arith.constant 0 : index
    %0 = vector.load %arg1[%c0, %c0_0] : memref<8x128xf32, #tpu.memory_space<vmem>>, vector<8x128xf32>
    %1 = arith.truncf %0 : vector<8x128xf32> to vector<8x128xbf16>
    %c0_1 = arith.constant 0 : index
    %c0_2 = arith.constant 0 : index
    %2 = vector.load %arg2[%c0_1, %c0_2] : memref<128x256xbf16, #tpu.memory_space<vmem>>, vector<128x256xbf16>
    %cst = arith.constant dense<0.000000e+00> : vector<8x256xf32>
    %3 = tpu.matmul %1, %2, %cst {dimension_numbers = #tpu.dot_dimension_numbers<[1], [0], [0], [1], [0, 0, 1, 1], [], []>} : vector<8x128xbf16>, vector<128x256xbf16>, vector<8x256xf32> -> vector<8x256xf32>
    %c0_3 = arith.constant 0 : index
    %c0_4 = arith.constant 0 : index
    %4 = vector.load %arg3[%c0_3, %c0_4] : memref<1x256xf32, #tpu.memory_space<vmem>>, vector<1x256xf32>
    %5 = vector.broadcast %4 : vector<1x256xf32> to vector<8x256xf32>
    %6 = arith.addf %3, %5 : vector<8x256xf32>
    %cst_5 = arith.constant 0.00999999977 : f32
    %7 = vector.broadcast %cst_5 : f32 to vector<8x256xf32>
    %8 = arith.mulf %7, %6 : vector<8x256xf32>
    %9 = arith.maximumf %6, %8 : vector<8x256xf32>
    %10 = arith.truncf %9 : vector<8x256xf32> to vector<8x256xbf16>
    %c0_6 = arith.constant 0 : index
    %c0_7 = arith.constant 0 : index
    %11 = vector.load %arg4[%c0_6, %c0_7] : memref<256x256xbf16, #tpu.memory_space<vmem>>, vector<256x256xbf16>
    %cst_8 = arith.constant dense<0.000000e+00> : vector<8x256xf32>
    %12 = tpu.matmul %10, %11, %cst_8 {dimension_numbers = #tpu.dot_dimension_numbers<[1], [0], [0], [1], [0, 0, 1, 1], [], []>} : vector<8x256xbf16>, vector<256x256xbf16>, vector<8x256xf32> -> vector<8x256xf32>
    %c0_9 = arith.constant 0 : index
    %c0_10 = arith.constant 0 : index
    %13 = vector.load %arg5[%c0_9, %c0_10] : memref<1x256xf32, #tpu.memory_space<vmem>>, vector<1x256xf32>
    %14 = vector.broadcast %13 : vector<1x256xf32> to vector<8x256xf32>
    %15 = arith.addf %12, %14 : vector<8x256xf32>
    %cst_11 = arith.constant 0.00999999977 : f32
    %16 = vector.broadcast %cst_11 : f32 to vector<8x256xf32>
    %17 = arith.mulf %16, %15 : vector<8x256xf32>
    %18 = arith.maximumf %15, %17 : vector<8x256xf32>
    %19 = arith.truncf %18 : vector<8x256xf32> to vector<8x256xbf16>
    %c0_12 = arith.constant 0 : index
    %c0_13 = arith.constant 0 : index
    %20 = vector.load %arg6[%c0_12, %c0_13] : memref<256x256xbf16, #tpu.memory_space<vmem>>, vector<256x256xbf16>
    %cst_14 = arith.constant dense<0.000000e+00> : vector<8x256xf32>
    %21 = tpu.matmul %19, %20, %cst_14 {dimension_numbers = #tpu.dot_dimension_numbers<[1], [0], [0], [1], [0, 0, 1, 1], [], []>} : vector<8x256xbf16>, vector<256x256xbf16>, vector<8x256xf32> -> vector<8x256xf32>
    %c0_15 = arith.constant 0 : index
    %c0_16 = arith.constant 0 : index
    %22 = vector.load %arg7[%c0_15, %c0_16] : memref<1x256xf32, #tpu.memory_space<vmem>>, vector<1x256xf32>
    %23 = vector.broadcast %22 : vector<1x256xf32> to vector<8x256xf32>
    %24 = arith.addf %21, %23 : vector<8x256xf32>
    %cst_17 = arith.constant 0.00999999977 : f32
    %25 = vector.broadcast %cst_17 : f32 to vector<8x256xf32>
    %26 = arith.mulf %25, %24 : vector<8x256xf32>
    %27 = arith.maximumf %24, %26 : vector<8x256xf32>
    %28 = arith.truncf %27 : vector<8x256xf32> to vector<8x256xbf16>
    %c0_18 = arith.constant 0 : index
    %c0_19 = arith.constant 0 : index
    %29 = vector.load %arg8[%c0_18, %c0_19] : memref<256x256xbf16, #tpu.memory_space<vmem>>, vector<256x256xbf16>
    %cst_20 = arith.constant dense<0.000000e+00> : vector<8x256xf32>
    %30 = tpu.matmul %28, %29, %cst_20 {dimension_numbers = #tpu.dot_dimension_numbers<[1], [0], [0], [1], [0, 0, 1, 1], [], []>} : vector<8x256xbf16>, vector<256x256xbf16>, vector<8x256xf32> -> vector<8x256xf32>
    %c0_21 = arith.constant 0 : index
    %c0_22 = arith.constant 0 : index
    %31 = vector.load %arg9[%c0_21, %c0_22] : memref<1x256xf32, #tpu.memory_space<vmem>>, vector<1x256xf32>
    %32 = vector.broadcast %31 : vector<1x256xf32> to vector<8x256xf32>
    %33 = arith.addf %30, %32 : vector<8x256xf32>
    %cst_23 = arith.constant 0.00999999977 : f32
    %34 = vector.broadcast %cst_23 : f32 to vector<8x256xf32>
    %35 = arith.mulf %34, %33 : vector<8x256xf32>
    %36 = arith.maximumf %33, %35 : vector<8x256xf32>
    %37 = arith.truncf %36 : vector<8x256xf32> to vector<8x256xbf16>
    %c0_24 = arith.constant 0 : index
    %c0_25 = arith.constant 0 : index
    %38 = vector.load %arg10[%c0_24, %c0_25] : memref<256x256xbf16, #tpu.memory_space<vmem>>, vector<256x256xbf16>
    %cst_26 = arith.constant dense<0.000000e+00> : vector<8x256xf32>
    %39 = tpu.matmul %37, %38, %cst_26 {dimension_numbers = #tpu.dot_dimension_numbers<[1], [0], [0], [1], [0, 0, 1, 1], [], []>} : vector<8x256xbf16>, vector<256x256xbf16>, vector<8x256xf32> -> vector<8x256xf32>
    %c0_27 = arith.constant 0 : index
    %c0_28 = arith.constant 0 : index
    %40 = vector.load %arg11[%c0_27, %c0_28] : memref<1x256xf32, #tpu.memory_space<vmem>>, vector<1x256xf32>
    %41 = vector.broadcast %40 : vector<1x256xf32> to vector<8x256xf32>
    %42 = arith.addf %39, %41 : vector<8x256xf32>
    %cst_29 = arith.constant 0.00999999977 : f32
    %43 = vector.broadcast %cst_29 : f32 to vector<8x256xf32>
    %44 = arith.mulf %43, %42 : vector<8x256xf32>
    %45 = arith.maximumf %42, %44 : vector<8x256xf32>
    %46 = arith.truncf %45 : vector<8x256xf32> to vector<8x256xbf16>
    %c0_30 = arith.constant 0 : index
    %c0_31 = arith.constant 0 : index
    %47 = vector.load %arg12[%c0_30, %c0_31] : memref<256x256xbf16, #tpu.memory_space<vmem>>, vector<256x256xbf16>
    %cst_32 = arith.constant dense<0.000000e+00> : vector<8x256xf32>
    %48 = tpu.matmul %46, %47, %cst_32 {dimension_numbers = #tpu.dot_dimension_numbers<[1], [0], [0], [1], [0, 0, 1, 1], [], []>} : vector<8x256xbf16>, vector<256x256xbf16>, vector<8x256xf32> -> vector<8x256xf32>
    %c0_33 = arith.constant 0 : index
    %c0_34 = arith.constant 0 : index
    %49 = vector.load %arg13[%c0_33, %c0_34] : memref<1x256xf32, #tpu.memory_space<vmem>>, vector<1x256xf32>
    %50 = vector.broadcast %49 : vector<1x256xf32> to vector<8x256xf32>
    %51 = arith.addf %48, %50 : vector<8x256xf32>
    %cst_35 = arith.constant 0.00999999977 : f32
    %52 = vector.broadcast %cst_35 : f32 to vector<8x256xf32>
    %53 = arith.mulf %52, %51 : vector<8x256xf32>
    %54 = arith.maximumf %51, %53 : vector<8x256xf32>
    %c0_36 = arith.constant 0 : index
    %c0_37 = arith.constant 0 : index
    %55 = vector.load %arg14[%c0_36, %c0_37] : memref<1x256xf32, #tpu.memory_space<vmem>>, vector<1x256xf32>
    %56 = vector.broadcast %55 : vector<1x256xf32> to vector<8x256xf32>
    %57 = arith.mulf %54, %56 : vector<8x256xf32>
    %cst_38 = arith.constant dense<0.000000e+00> : vector<8xf32>
    %58 = vector.multi_reduction <add>, %57, %cst_38 [1] : vector<8x256xf32> to vector<8xf32>
    %59 = vector.shape_cast %58 : vector<8xf32> to vector<8x1xf32>
    %c0_39 = arith.constant 0 : index
    %c0_40 = arith.constant 0 : index
    %60 = vector.load %arg15[%c0_39, %c0_40] : memref<1x1xf32, #tpu.memory_space<vmem>>, vector<1x1xf32>
    %61 = vector.broadcast %60 : vector<1x1xf32> to vector<8x1xf32>
    %62 = arith.addf %59, %61 : vector<8x1xf32>
    %c0_41 = arith.constant 0 : index
    %c0_42 = arith.constant 0 : index
    %63 = vector.load %arg16[%c0_41, %c0_42] : memref<8x1xf32, #tpu.memory_space<vmem>>, vector<8x1xf32>
    tpu.vector_store %arg16[%c0_41, %c0_42], %62 {strides = array<i32>} : memref<8x1xf32, #tpu.memory_space<vmem>>, vector<8x1xf32>,
    return
  }
  func.func @transform_0(%arg0: i32) -> (i32, i32) {
    %c0_i32 = arith.constant 0 : i32
    %c0_i32_0 = arith.constant 0 : i32
    return %arg0, %c0_i32 : i32, i32
  }
  func.func @transform_1(%arg0: i32) -> (i32, i32) {
    %c0_i32 = arith.constant 0 : i32
    %c0_i32_0 = arith.constant 0 : i32
    %c0_i32_1 = arith.constant 0 : i32
    return %c0_i32, %c0_i32_0 : i32, i32
  }
  func.func @transform_2(%arg0: i32) -> (i32, i32) {
    %c0_i32 = arith.constant 0 : i32
    %c0_i32_0 = arith.constant 0 : i32
    %c0_i32_1 = arith.constant 0 : i32
    return %c0_i32, %c0_i32_0 : i32, i32
  }
  func.func @transform_3(%arg0: i32) -> (i32, i32) {
    %c0_i32 = arith.constant 0 : i32
    %c0_i32_0 = arith.constant 0 : i32
    %c0_i32_1 = arith.constant 0 : i32
    return %c0_i32, %c0_i32_0 : i32, i32
  }
  func.func @transform_4(%arg0: i32) -> (i32, i32) {
    %c0_i32 = arith.constant 0 : i32
    %c0_i32_0 = arith.constant 0 : i32
    %c0_i32_1 = arith.constant 0 : i32
    return %c0_i32, %c0_i32_0 : i32, i32
  }
  func.func @transform_5(%arg0: i32) -> (i32, i32) {
    %c0_i32 = arith.constant 0 : i32
    %c0_i32_0 = arith.constant 0 : i32
    %c0_i32_1 = arith.constant 0 : i32
    return %c0_i32, %c0_i32_0 : i32, i32
  }
  func.func @transform_6(%arg0: i32) -> (i32, i32) {
    %c0_i32 = arith.constant 0 : i32
    %c0_i32_0 = arith.constant 0 : i32
    %c0_i32_1 = arith.constant 0 : i32
    return %c0_i32, %c0_i32_0 : i32, i32
  }
  func.func @transform_7(%arg0: i32) -> (i32, i32) {
    %c0_i32 = arith.constant 0 : i32
    %c0_i32_0 = arith.constant 0 : i32
    %c0_i32_1 = arith.constant 0 : i32
    return %c0_i32, %c0_i32_0 : i32, i32
  }
  func.func @transform_8(%arg0: i32) -> (i32, i32) {
    %c0_i32 = arith.constant 0 : i32
    %c0_i32_0 = arith.constant 0 : i32
    %c0_i32_1 = arith.constant 0 : i32
    return %c0_i32, %c0_i32_0 : i32, i32
  }
  func.func @transform_9(%arg0: i32) -> (i32, i32) {
    %c0_i32 = arith.constant 0 : i32
    %c0_i32_0 = arith.constant 0 : i32
    %c0_i32_1 = arith.constant 0 : i32
    return %c0_i32, %c0_i32_0 : i32, i32
  }
  func.func @transform_10(%arg0: i32) -> (i32, i32) {
    %c0_i32 = arith.constant 0 : i32
    %c0_i32_0 = arith.constant 0 : i32
    %c0_i32_1 = arith.constant 0 : i32
    return %c0_i32, %c0_i32_0 : i32, i32
  }
  func.func @transform_11(%arg0: i32) -> (i32, i32) {
    %c0_i32 = arith.constant 0 : i32
    %c0_i32_0 = arith.constant 0 : i32
    %c0_i32_1 = arith.constant 0 : i32
    return %c0_i32, %c0_i32_0 : i32, i32
  }
  func.func @transform_12(%arg0: i32) -> (i32, i32) {
    %c0_i32 = arith.constant 0 : i32
    %c0_i32_0 = arith.constant 0 : i32
    %c0_i32_1 = arith.constant 0 : i32
    return %c0_i32, %c0_i32_0 : i32, i32
  }
  func.func @transform_13(%arg0: i32) -> (i32, i32) {
    %c0_i32 = arith.constant 0 : i32
    %c0_i32_0 = arith.constant 0 : i32
    %c0_i32_1 = arith.constant 0 : i32
    return %c0_i32, %c0_i32_0 : i32, i32
  }
  func.func @transform_14(%arg0: i32) -> (i32, i32) {
    %c0_i32 = arith.constant 0 : i32
    %c0_i32_0 = arith.constant 0 : i32
    %c0_i32_1 = arith.constant 0 : i32
    return %c0_i32, %c0_i32_0 : i32, i32
  }
  func.func @transform_15(%arg0: i32) -> (i32, i32) {
    %c0_i32 = arith.constant 0 : i32
    %c0_i32_0 = arith.constant 0 : i32
    return %arg0, %c0_i32 : i32, i32
  }
}

</mosaic_0001>

<bundles_post_ra>
// kernel: tpu_custom_call.1
= control target key start
LH: loop header
LB: loop body
LE: loop exit
PB: predicated region body
PF: predicated region fallthrough
CT: control target
= control target key end

     0   :  { %s3295_s0 = inlined_call_operand.hbm [shape: f32[16,128], index: 0, kind: input, shape index: {}]   ;;  %s3296_s1 = inlined_call_operand.hbm [shape: bf16[128,256], index: 1, kind: input, shape index: {}]   ;;  %s3297_s2 = inlined_call_operand.vmem [shape: f32[1,256], index: 2, kind: input, shape index: {}]   ;;  %s3298_s3 = inlined_call_operand.hbm [shape: bf16[256,256], index: 3, kind: input, shape index: {}]   ;;  %s3299_s4 = inlined_call_operand.vmem [shape: f32[1,256], index: 4, kind: input, shape index: {}]   ;;  %s3300_s5 = inlined_call_operand.hbm [shape: bf16[256,256], index: 5, kind: input, shape index: {}]   ;;  %s3301_s6 = inlined_call_operand.vmem [shape: f32[1,256], index: 6, kind: input, shape index: {}]   ;;  %s3302_s7 = inlined_call_operand.hbm [shape: bf16[256,256], index: 7, kind: input, shape index: {}]   ;;  %s3303_s8 = inlined_call_operand.vmem [shape: f32[1,256], index: 8, kind: input, shape index: {}]   ;;  %s3304_s9 = inlined_call_operand.hbm [shape: bf16[256,256], index: 9, kind: input, shape index: {}]   ;;  %s3305_s10 = inlined_call_operand.vmem [shape: f32[1,256], index: 10, kind: input, shape index: {}]   ;;  %s3306_s11 = inlined_call_operand.hbm [shape: bf16[256,256], index: 11, kind: input, shape index: {}]   ;;  %s3307_s12 = inlined_call_operand.vmem [shape: f32[1,256], index: 12, kind: input, shape index: {}]   ;;  %s3308_s13 = inlined_call_operand.vmem [shape: f32[1,256], index: 13, kind: input, shape index: {}]   ;;  %s3309_s14 = inlined_call_operand.<no memory space> [shape: f32[1,1], index: 14, kind: input, shape index: {}]   ;;  %s3310_s15 = inlined_call_operand.vmem [shape: f32[16,1], index: 15, kind: output, shape index: {}]  }
   0x1   :  { %3314 = sst [smem:[#allocation18_spill]] %s3296_s1  ;;  %v20_v0 = vstv %s3309_s14 }
   0x2   :  { %3315 = sst [smem:[#allocation19_spill]] %s3298_s3  ;;  %21 = vst [vmem:[#allocation2] sm:$0x1] %v20_v0 }
   0x3   :  { %3316 = sst [smem:[#allocation20_spill]] %s3300_s5 }
   0x4   :  { %3317 = sst [smem:[#allocation21_spill]] %s3302_s7 }
   0x5   :  { %3318 = sst [smem:[#allocation22_spill]] %s3310_s15 }
   0x6   :  { %22 = vsyncpa [#allocation4], 0 }
   0x7   :  { %24 = vsyncpa [#allocation4 + $0x1], 0 }
   0x8   :  { %25 = vsyncpa [#allocation6], 0 }
   0x9   :  { %26 = vsyncpa [#allocation9], 0 }
   0xa   :  { %27 = vsyncpa [#allocation12], 0  ;;  %s3050_s20 = smov 0   ;;  %s3052_s21 = smov 0  }
   0xb   :  { %s3054_s22 = smov 0   ;;  %s3056_s23 = smov 0  }
   0xc LB: > { %s2957_s14 = smov [#allocation5]   ;;  %s3071_s25 = sadd.s32 4294967295, %s2955_s23   ;;  %s2955_s23 = sphi %s3056_s23, %s3340_s23   ;;  %s2951_s22 = sphi %s3054_s22, %s3339_s22   ;;  %s2947_s21 = sphi %s3052_s21, %s3338_s21   ;;  %s2943_s20 = sphi %s3050_s20, %s3337_s20  }
   0xd   : > { %s396_s24 = sshll.u32 %s2957_s14, 4  ;;  %p2160_p0 = scmp.ge.s32.totalorder %s2955_s23, 1  ;;  %s397_s24 = int_to_ptr.vmem [resolvable:$true] %s396_s24 }
   0xe   : > { %p3311_p1 = scmp.eq.s32.totalorder %s3071_s25, 0  ;;  %p384_p2 = scmp.lt.s32.totalorder %s2955_s23, 3 }
   0xf   : > { %s2958_s27 = smov [#allocation8]   ;;  %s2959_s30 = smov [#allocation11]  }
  0x10   : > { %p3076_p3 = pnand %p2160_p0, %p384_p2  ;;  %s428_s28 = sshll.u32 %s2958_s27, 4  ;;  %s3088_s28 = int_to_ptr.vmem [resolvable:$true] %s428_s28 }
  0x11   : > { %s460_s16 = sshll.u32 %s2959_s30, 4  ;;  %s2736_s18 = scalar_lea.vmem %s397_s24, 2048  ;;  %s3090_s16 = int_to_ptr.vmem [resolvable:$true] %s460_s16 }
  0x12   : > { %s3319_s26 = scalar_select %p3076_p3, 1, 0 }
  0x13   : > { %p2384_p4 = pneg %p3076_p3  ;;  %p2737_p7 = scmp.ne.s32.totalorder %s397_s24, %s2736_s18 }
  0x14   : > { %p2744_p10 = scmp.lt.s32.totalorder %s397_s24, %s397_s24  ;;  %p2745_p11 = scmp.lt.s32.totalorder %s2736_s18, %s2736_s18 }
  0x15   : > { %p3084_p5 = pnand %p2384_p4, %p3311_p1 }
  0x16   : > { %p2746_p12 = por %p2745_p11, %p2744_p10 }
  0x17   : > { %p3094_p6 = pneg %p3084_p5 }
  0x19   : > { %p2739_p8 = pnand %p2737_p7, %p3094_p6 }
  0x1b   : > { %p2740_p9 = pneg %p2739_p8 }
  0x1d   : > { %p2747_p13 = pnand %p2746_p12, %p2740_p9 }
  0x1f   : > { %2750 = shalt.err (!%p2747_p13)
}
  0x20   : > { %s2960_s19 = smov 128   ;;  %s2961_s14 = smov 8  }
  0x21   : > { %s3322_s1 = sld [smem:[#allocation18_spill]]  ;;  %s2762_s15 = scalar_lea.vmem %s3088_s28, 4096 }
  0x22   : > { %p2763_p0 = scmp.ne.s32.totalorder %s3088_s28, %s2762_s15  ;;  %p2770_p7 = scmp.lt.s32.totalorder %s3088_s28, %s3088_s28 }
  0x23   : > { %p2771_p8 = scmp.lt.s32.totalorder %s2762_s15, %s2762_s15 }
  0x24   : > { %p2765_p2 = pnand %p2763_p0, %p3094_p6 }
  0x25   : > { %p2772_p9 = por %p2771_p8, %p2770_p7 }
  0x26   : > { %p2766_p4 = pneg %p2765_p2 }
  0x27   : > { %2387 = dma.hbm_to_vmem [thread:$0]  (!%p3084_p5), %s3322_s1, 2048, %s397_s24, [#allocation6], %s2960_s19, %s2960_s19, %s2961_s14  }
  0x28   : > { %p2773_p10 = pnand %p2772_p9, %p2766_p4 }
  0x2a   : > { %2776 = shalt.err (!%p2773_p10)
}
  0x2b   : > { %s3323_s5 = sld [smem:[#allocation20_spill]]  ;;  %s2788_s24 = scalar_lea.vmem %s3090_s16, 4096 }
  0x2c   : > { %p2789_p11 = scmp.ne.s32.totalorder %s3090_s16, %s2788_s24  ;;  %p2796_p0 = scmp.lt.s32.totalorder %s3090_s16, %s3090_s16 }
  0x2d   : > { %p2797_p2 = scmp.lt.s32.totalorder %s2788_s24, %s2788_s24 }
  0x2e   : > { %p2791_p12 = pnand %p2789_p11, %p3094_p6 }
  0x2f   : > { %p2798_p4 = por %p2797_p2, %p2796_p0 }
  0x30   : > { %p2792_p13 = pneg %p2791_p12 }
  0x31   : > { %2393 = dma.hbm_to_vmem [thread:$0]  (!%p3084_p5), %s3323_s5, 4096, %s3088_s28, [#allocation9], %s2960_s19, %s2960_s19, %s2961_s14  }
  0x32   : > { %p2799_p7 = pnand %p2798_p4, %p2792_p13 }
  0x34   : > { %2802 = shalt.err (!%p2799_p7)
}
  0x35   : > { %2399 = dma.hbm_to_vmem [thread:$0]  (!%p3084_p5), %s3304_s9, 4096, %s3090_s16, [#allocation12], %s2960_s19, %s2960_s19, %s2961_s14  }
  0x36   : > { %s2962_s28 = smov [#allocation7]   ;;  %s2963_s27 = smov [#allocation10]  }
  0x37   : > { %s412_s18 = sshll.u32 %s2962_s28, 4  ;;  %s444_s1 = sshll.u32 %s2963_s27, 4  ;;  %s413_s18 = int_to_ptr.vmem [resolvable:$true] %s412_s18  ;;  %s445_s1 = int_to_ptr.vmem [resolvable:$true] %s444_s1 }
  0x38   : > { %s2814_s24 = scalar_lea.vmem %s413_s18, 4096  ;;  %p2822_p11 = scmp.lt.s32.totalorder %s413_s18, %s413_s18 }
  0x39   : > { %p2815_p8 = scmp.ne.s32.totalorder %s413_s18, %s2814_s24  ;;  %p2823_p12 = scmp.lt.s32.totalorder %s2814_s24, %s2814_s24 }
  0x3b   : > { %p2817_p9 = pnand %p2815_p8, %p3094_p6  ;;  %p2824_p13 = por %p2823_p12, %p2822_p11 }
  0x3d   : > { %p2818_p10 = pneg %p2817_p9 }
  0x3f   : > { %p2825_p0 = pnand %p2824_p13, %p2818_p10 }
  0x41   : > { %2828 = shalt.err (!%p2825_p0)
}
  0x42   : > { %s3324_s3 = sld [smem:[#allocation19_spill]]  ;;  %s2840_s30 = scalar_lea.vmem %s445_s1, 4096 }
  0x43   : > { %p2841_p2 = scmp.ne.s32.totalorder %s445_s1, %s2840_s30  ;;  %p2848_p8 = scmp.lt.s32.totalorder %s445_s1, %s445_s1 }
  0x44   : > { %p2849_p9 = scmp.lt.s32.totalorder %s2840_s30, %s2840_s30 }
  0x45   : > { %p2843_p4 = pnand %p2841_p2, %p3094_p6 }
  0x46   : > { %p2850_p10 = por %p2849_p9, %p2848_p8 }
  0x47   : > { %p2844_p7 = pneg %p2843_p4 }
  0x48   : > { %2390 = dma.hbm_to_vmem [thread:$0]  (!%p3084_p5), %s3324_s3, 4096, %s413_s18, [#allocation6], %s2960_s19, %s2960_s19, %s2961_s14  }
  0x49   : > { %p2851_p11 = pnand %p2850_p10, %p2844_p7 }
  0x4b   : > { %2854 = shalt.err (!%p2851_p11)
}
  0x4c   : > { %s3325_s7 = sld [smem:[#allocation21_spill]]  ;;  %s2964_s18 = smov [#allocation13]  }
  0x4d   : > { %s476_s24 = sshll.u32 %s2964_s18, 4  ;;  %s477_s24 = int_to_ptr.vmem [resolvable:$true] %s476_s24 }
  0x4e   : > { %s2866_s16 = scalar_lea.vmem %s477_s24, 4096  ;;  %p2874_p2 = scmp.lt.s32.totalorder %s477_s24, %s477_s24 }
  0x4f   : > { %p2867_p12 = scmp.ne.s32.totalorder %s477_s24, %s2866_s16  ;;  %p2875_p4 = scmp.lt.s32.totalorder %s2866_s16, %s2866_s16 }
  0x51   : > { %p2869_p13 = pnand %p2867_p12, %p3094_p6  ;;  %p2876_p7 = por %p2875_p4, %p2874_p2 }
  0x52   : > { %2396 = dma.hbm_to_vmem [thread:$0]  (!%p3084_p5), %s3325_s7, 4096, %s445_s1, [#allocation9], %s2960_s19, %s2960_s19, %s2961_s14  }
  0x53   : > { %p2870_p0 = pneg %p2869_p13 }
  0x55   : > { %p2877_p8 = pnand %p2876_p7, %p2870_p0 }
  0x57   : > { %2880 = shalt.err (!%p2877_p8)
}
  0x58   : > { %2402 = dma.hbm_to_vmem [thread:$0]  (!%p3084_p5), %s3306_s11, 4096, %s477_s24, [#allocation12], %s2960_s19, %s2960_s19, %s2961_s14  }
  0x59   : > { %s3169_s29 = sadd.s32 1, %s2955_s23   ;;  %s40_s17 = sadd.s32 1, %s2951_s22 }
  0x5a   : > { %s37_s30 = ssub.s32 %s2955_s23, %s3169_s29  ;;  %p47_p6 = scmp.ne.s32.totalorder %s2951_s22, %s2947_s21 }
  0x5b   : > { %p38_p9 = scmp.eq.s32.totalorder %s37_s30, 0  ;;  %p48_p10 = scmp.eq.s32.totalorder %s2955_s23, 0 }
  0x5c   : > { %p53_p11 = scmp.ne.s32.totalorder %s2947_s21, %s2943_s20  ;;  %p2413_p12 = scmp.lt.s32.totalorder %s2955_s23, 2 }
  0x5d   : > { %s3181_s28 = scalar_select %p38_p9, %s2951_s22, %s40_s17  }
  0x5e   : > { %p49_p13 = por %p48_p10, %p47_p6  ;;  %p3185_p0 = por %p3311_p1, %p53_p11 }
  0x5f   : > { %s499_s18 = sand.u32 1, %s2951_s22   ;;  %s2169_s19 = sshll.u32 %s2955_s23, 7 }
  0x60   : > { %s3326_s27 = scalar_select %p3185_p0, 1, 0 }
  0x61   : > { %s2168_s14 = sshll.u32 %s499_s18, 3  ;;  %s3194_s15 = scalar_lea.hbm %s3295_s0, %s2169_s19 }
  0x62   : > { %s503_s20 = scalar_lea.vmem [#allocation3], %s2168_s14  ;;  %p3196_p5 = pnand %p2413_p12, %p49_p13 }
  0x63   : > { %s510_s1 = sshll.u32 %s503_s20, 4  ;;  %s500_s30 = scalar_lea.sflag [#allocation4], %s499_s18  ;;  %s511_s1 = int_to_ptr.vmem [resolvable:$true] %s510_s1 }
  0x64   : > { %s2881_s3 = scalar_lea.hbm %s3194_s15, 128  ;;  %p2883_p4 = pneg %p3196_p5 }
  0x65   : > { %p2882_p2 = scmp.ne.s32.totalorder %s3194_s15, %s2881_s3  ;;  %s2886_s24 = scalar_lea.hbm %s3295_s0, 256 }
  0x66   : > { %p2887_p6 = scmp.lt.s32.totalorder %s3194_s15, %s3295_s0  ;;  %p2888_p9 = scmp.lt.s32.totalorder %s2886_s24, %s2881_s3 }
  0x67   : > { %p2884_p7 = pnand %p2883_p4, %p2882_p2 }
  0x68   : > { %p2889_p10 = por %p2888_p9, %p2887_p6 }
  0x69   : > { %p2885_p8 = pneg %p2884_p7 }
  0x6b   : > { %p2890_p11 = pnand %p2889_p10, %p2885_p8 }
  0x6d   : > { %2893 = shalt.err (!%p2890_p11)
}
  0x6e   : > { %s2894_s20 = scalar_lea.vmem %s511_s1, 128  ;;  %s2965_s18 = smov [#allocation3]  }
  0x6f   : > { %p2895_p12 = scmp.ne.s32.totalorder %s511_s1, %s2894_s20  ;;  %s2899_s5 = sshll.u32 %s2965_s18, 4  ;;  %s2900_s5 = int_to_ptr.vmem [resolvable:$false] %s2899_s5 }
  0x70   : > { %s2901_s7 = scalar_lea.vmem %s2900_s5, 256  ;;  %p2902_p2 = scmp.lt.s32.totalorder %s511_s1, %s2900_s5 }
  0x71   : > { %p2897_p13 = pnand %p2895_p12, %p2883_p4  ;;  %p2903_p7 = scmp.lt.s32.totalorder %s2901_s7, %s2894_s20 }
  0x73   : > { %p2898_p1 = pneg %p2897_p13  ;;  %p2904_p0 = por %p2903_p7, %p2902_p2 }
  0x75   : > { %p2905_p3 = pnand %p2904_p0, %p2898_p1 }
  0x77   : > { %2908 = shalt.err (!%p2905_p3)
}
  0x78   : > { %2406 = dma.hbm_to_vmem [thread:$0]  (!%p3196_p5), %s3194_s15, 128, %s511_s1, %s500_s30  }
  0x79   : > { %p3328_p8 = scmp.ne.s32.totalorder %s3319_s26, 0 }
  0x7a   : > { %s521_s3 = sand.u32 (!%p3328_p8), 1, %s2947_s21   ;;  %p3329_p4 = scmp.ne.s32.totalorder (!%p3328_p8), %s3326_s27, 0 }
  0x7b   : > { %519 = sbr.rel (%p3328_p8) target bundleno = 1537 (0x601), region = 80  ;;  %s3217_s23 = sshll.u32 (!%p3328_p8), %s521_s3, 3 }
  0x7c   : > { %s522_s19 = scalar_lea.sflag (!%p3328_p8), [#allocation4], %s521_s3  ;;  %s525_s24 = scalar_lea.vmem (!%p3328_p8), [#allocation3], %s3217_s23 }
  0x80   : > { %2926 = dma.done.wait (%p3329_p4), %s522_s19, 128  }
  0x81   : > { %2928 = vsyncadd (%p3329_p4), %s522_s19, 4294967168  ;;  %p3330_p1 = scmp.eq.s32.totalorder %s3071_s25, 0 }
  0x83   : > { %2930 = dma.done.wait (%p3330_p1), [#allocation6], 6144   ;;  %p3331_p3 = pmov %p3330_p1 }
  0x84   : > { %p3332_p0 = pmov %p3330_p1 }
  0x85   : > { %2932 = vsyncadd (%p3331_p3), [#allocation6], 4294961152 }
  0x86   : > { %2934 = dma.done.wait (%p3332_p0), [#allocation9], 8192   ;;  %p3333_p5 = pmov %p3332_p0 }
  0x87   : > { %p3334_p6 = pmov %p3332_p0 }
  0x88   : > { %2936 = vsyncadd (%p3333_p5), [#allocation9], 4294959104 }
  0x89   : > { %2938 = dma.done.wait (%p3334_p6), [#allocation12], 8192   ;;  %p3335_p9 = pmov %p3332_p0 }
  0x8a   : > { %v2966_v1 = vmov 0   ;;  %v2461_v2 = vld [vmem:[#allocation5 + $0x74] ss:$8 sps:$4 sm:$0xff]   ;;  %v2463_v3 = vld [vmem:[#allocation5 + $0x70] ss:$8 sps:$4 sm:$0xff]   ;;  %p595_p10 = scmp.lt.s32.totalorder %s3071_s25, 1 }
  0x8b   : > { %2940 = vsyncadd (%p3335_p9), [#allocation12], 4294959104  ;;  %742 = vmatprep.mubr.bf16.mxu0 %v2966_v1  ;;  %710 = vmatprep.subr.bf16.mxu0 %v2461_v2  ;;  %v2464_v4 = vld [vmem:[#allocation5 + $0x64] ss:$8 sps:$4 sm:$0xff]   ;;  %v2466_v5 = vld [vmem:[#allocation5 + $0x60] ss:$8 sps:$4 sm:$0xff]  }
  0x8c   : > { %711 = vmatpush1.bf16.msra.mxu0 %v2463_v3  ;;  %v2467_v6 = vld [vmem:[#allocation5 + $0x54] ss:$8 sps:$4 sm:$0xff]   ;;  %v2469_v7 = vld [vmem:[#allocation5 + $0x50] ss:$8 sps:$4 sm:$0xff]   ;;  %v2470_v8 = vld [vmem:[#allocation5 + $0x44] ss:$8 sps:$4 sm:$0xff]  }
  0x8d   : > { %712 = vmatprep.subr.bf16.mxu0 %v2464_v4  ;;  %v2472_v9 = vld [vmem:[#allocation5 + $0x40] ss:$8 sps:$4 sm:$0xff]   ;;  %v2473_v10 = vld [vmem:[#allocation5 + $0x34] ss:$8 sps:$4 sm:$0xff]   ;;  %v2487_v12 = vld [vmem:[#allocation7 + $0x70] ss:$8 sps:$4 sm:$0xff]  }
  0x8e   : > { %v2485_v11 = vld [vmem:[#allocation7 + $0x74] ss:$8 sps:$4 sm:$0xff]   ;;  %v2488_v13 = vld [vmem:[#allocation7 + $0x64] ss:$8 sps:$4 sm:$0xff]   ;;  %v2475_v14 = vld [vmem:[#allocation5 + $0x30] ss:$8 sps:$4 sm:$0xff]  }
  0x8f   : > { %961 = vmatprep.subr.bf16.mxu1 %v2485_v11  ;;  %v2490_v15 = vld [vmem:[#allocation7 + $0x60] ss:$8 sps:$4 sm:$0xff]   ;;  %v2491_v16 = vld [vmem:[#allocation7 + $0x54] ss:$8 sps:$4 sm:$0xff]   ;;  %v2476_v17 = vld [vmem:[#allocation5 + $0x24] ss:$8 sps:$4 sm:$0xff]  }
  0x90   : > { %713 = vmatpush1.bf16.msra.mxu0 %v2466_v5  ;;  %962 = vmatpush1.bf16.msra.mxu1 %v2487_v12  ;;  %v2478_v18 = vld [vmem:[#allocation5 + $0x20] ss:$8 sps:$4 sm:$0xff]   ;;  %v2493_v19 = vld [vmem:[#allocation7 + $0x50] ss:$8 sps:$4 sm:$0xff]   ;;  %v2494_v20 = vld [vmem:[#allocation7 + $0x44] ss:$8 sps:$4 sm:$0xff]  }
  0x91   : > { %714 = vmatprep.subr.bf16.mxu0 %v2467_v6  ;;  %963 = vmatprep.subr.bf16.mxu1 %v2488_v13  ;;  %v2479_v21 = vld [vmem:[#allocation5 + $0x14] ss:$8 sps:$4 sm:$0xff]   ;;  %v2481_v22 = vld [vmem:[#allocation5 + $0x10] ss:$8 sps:$4 sm:$0xff]   ;;  %v2496_v23 = vld [vmem:[#allocation7 + $0x40] ss:$8 sps:$4 sm:$0xff]  }
  0x92   : > { %v2497_v24 = vld [vmem:[#allocation7 + $0x34] ss:$8 sps:$4 sm:$0xff]   ;;  %v2482_v25 = vld [vmem:[#allocation5 + $0x4] ss:$8 sps:$4 sm:$0xff]   ;;  %v2484_v26 = vld [vmem:[#allocation5] ss:$8 sps:$4 sm:$0xff]  }
  0x93   : > { %v600_v27 = vld [vmem:[%s525_s24] sm:$0xff]  ;;  %v2500_v29 = vld [vmem:[#allocation7 + $0x24] ss:$8 sps:$4 sm:$0xff]   ;;  %v2502_v30 = vld [vmem:[#allocation7 + $0x20] ss:$8 sps:$4 sm:$0xff]   ;;  %s3342_s25 = smov (!%p595_p10, %s3071_s25), 1 }
  0x94   : > { %715 = vmatpush1.bf16.msra.mxu0 %v2469_v7  ;;  %964 = vmatpush1.bf16.msra.mxu1 %v2490_v15  ;;  %v2499_v28 = vld [vmem:[#allocation7 + $0x30] ss:$8 sps:$4 sm:$0xff]   ;;  %v2503_v31 = vld [vmem:[#allocation7 + $0x14] ss:$8 sps:$4 sm:$0xff]   ;;  %v601_v32 = vpack.c.bf16 %v600_v27, %v600_v27  ;;  %v2506_v34 = vld [vmem:[#allocation7 + $0x4] ss:$8 sps:$4 sm:$0xff]  }
  0x95   : > { %716 = vmatprep.subr.bf16.mxu0 %v2470_v8  ;;  %965 = vmatprep.subr.bf16.mxu1 %v2491_v16  ;;  %v2505_v33 = vld [vmem:[#allocation7 + $0x10] ss:$8 sps:$4 sm:$0xff]   ;;  %v2508_v35 = vld [vmem:[#allocation7] ss:$8 sps:$4 sm:$0xff]   ;;  %v2509_v36 = vld [vmem:[#allocation7 + $0xf4] ss:$8 sps:$4 sm:$0xff]  }
  0x96   : > { %v2511_v37 = vld [vmem:[#allocation7 + $0xf0] ss:$8 sps:$4 sm:$0xff]   ;;  %v2512_v38 = vld [vmem:[#allocation7 + $0xe4] ss:$8 sps:$4 sm:$0xff]   ;;  %v2514_v39 = vld [vmem:[#allocation7 + $0xe0] ss:$8 sps:$4 sm:$0xff]  }
  0x97   : > { %v2515_v40 = vld [vmem:[#allocation7 + $0xd4] ss:$8 sps:$4 sm:$0xff]   ;;  %v2517_v41 = vld [vmem:[#allocation7 + $0xd0] ss:$8 sps:$4 sm:$0xff]   ;;  %v2518_v42 = vld [vmem:[#allocation7 + $0xc4] ss:$8 sps:$4 sm:$0xff]  }
  0x98   : > { %717 = vmatpush1.bf16.msra.mxu0 %v2472_v9  ;;  %966 = vmatpush1.bf16.msra.mxu1 %v2493_v19  ;;  %v2520_v43 = vld [vmem:[#allocation7 + $0xc0] ss:$8 sps:$4 sm:$0xff]   ;;  %v2521_v44 = vld [vmem:[#allocation7 + $0xb4] ss:$8 sps:$4 sm:$0xff]   ;;  %v2523_v45 = vld [vmem:[#allocation7 + $0xb0] ss:$8 sps:$4 sm:$0xff]  }
  0x99   : > { %718 = vmatprep.subr.bf16.mxu0 %v2473_v10  ;;  %967 = vmatprep.subr.bf16.mxu1 %v2494_v20  ;;  %v2524_v46 = vld [vmem:[#allocation7 + $0xa4] ss:$8 sps:$4 sm:$0xff]   ;;  %v2526_v47 = vld [vmem:[#allocation7 + $0xa0] ss:$8 sps:$4 sm:$0xff]   ;;  %v2527_v48 = vld [vmem:[#allocation7 + $0x94] ss:$8 sps:$4 sm:$0xff]  }
  0x9a   : > { %v2529_v49 = vld [vmem:[#allocation7 + $0x90] ss:$8 sps:$4 sm:$0xff]   ;;  %v2530_v50 = vld [vmem:[#allocation7 + $0x84] ss:$8 sps:$4 sm:$0xff]   ;;  %v2532_v51 = vld [vmem:[#allocation7 + $0x80] ss:$8 sps:$4 sm:$0xff]  }
  0x9b   : > { %v2533_v52 = vld [vmem:[#allocation8 + $0x70] ss:$8 sps:$4 sm:$0xff]   ;;  %v2535_v53 = vld [vmem:[#allocation8 + $0x74] ss:$8 sps:$4 sm:$0xff]   ;;  %v2538_v54 = vld [vmem:[#allocation8 + $0x64] ss:$8 sps:$4 sm:$0xff]  }
  0x9c   : > { %719 = vmatpush1.bf16.msra.mxu0 %v2475_v14  ;;  %968 = vmatpush1.bf16.msra.mxu1 %v2496_v23  ;;  %v2536_v55 = vld [vmem:[#allocation8 + $0x60] ss:$8 sps:$4 sm:$0xff]   ;;  %v2541_v56 = vld [vmem:[#allocation8 + $0x54] ss:$8 sps:$4 sm:$0xff]   ;;  %v2539_v57 = vld [vmem:[#allocation8 + $0x50] ss:$8 sps:$4 sm:$0xff]   ;;  %v620_v14 = vlaneseq }
  0x9d   : > { %720 = vmatprep.subr.bf16.mxu0 %v2476_v17  ;;  %969 = vmatprep.subr.bf16.mxu1 %v2497_v24  ;;  %v2544_v58 = vld [vmem:[#allocation8 + $0x44] ss:$8 sps:$4 sm:$0xff]   ;;  %v2542_v59 = vld [vmem:[#allocation8 + $0x40] ss:$8 sps:$4 sm:$0xff]   ;;  %v2547_v60 = vld [vmem:[#allocation8 + $0x34] ss:$8 sps:$4 sm:$0xff]  }
  0x9e   : > { %v2545_v61 = vld [vmem:[#allocation8 + $0x30] ss:$8 sps:$4 sm:$0xff]   ;;  %v2550_v62 = vld [vmem:[#allocation8 + $0x24] ss:$8 sps:$4 sm:$0xff]   ;;  %v2548_v63 = vld [vmem:[#allocation8 + $0x20] ss:$8 sps:$4 sm:$0xff]  }
  0x9f   : > { %v2553_v0 = vld [vmem:[#allocation8 + $0x14] ss:$8 sps:$4 sm:$0xff]   ;;  %v2551_v1 = vld [vmem:[#allocation8 + $0x10] ss:$8 sps:$4 sm:$0xff]   ;;  %v2556_v2 = vld [vmem:[#allocation8 + $0x4] ss:$8 sps:$4 sm:$0xff]  }
  0xa0   : > { %721 = vmatpush1.bf16.msra.mxu0 %v2478_v18  ;;  %970 = vmatpush1.bf16.msra.mxu1 %v2499_v28  ;;  %v2554_v3 = vld [vmem:[#allocation8] ss:$8 sps:$4 sm:$0xff]   ;;  %v2559_v4 = vld [vmem:[#allocation8 + $0xf4] ss:$8 sps:$4 sm:$0xff]   ;;  %v2557_v5 = vld [vmem:[#allocation8 + $0xf0] ss:$8 sps:$4 sm:$0xff]  }
  0xa1   : > { %722 = vmatprep.subr.bf16.mxu0 %v2479_v21  ;;  %971 = vmatprep.subr.bf16.mxu1 %v2500_v29  ;;  %v2562_v6 = vld [vmem:[#allocation8 + $0xe4] ss:$8 sps:$4 sm:$0xff]   ;;  %v2560_v7 = vld [vmem:[#allocation8 + $0xe0] ss:$8 sps:$4 sm:$0xff]   ;;  %v2565_v8 = vld [vmem:[#allocation8 + $0xd4] ss:$8 sps:$4 sm:$0xff]  }
  0xa2   : > { %v2563_v9 = vld [vmem:[#allocation8 + $0xd0] ss:$8 sps:$4 sm:$0xff]   ;;  %v2568_v10 = vld [vmem:[#allocation8 + $0xc4] ss:$8 sps:$4 sm:$0xff]   ;;  %v2566_v11 = vld [vmem:[#allocation8 + $0xc0] ss:$8 sps:$4 sm:$0xff]  }
  0xa3   : > { %v2571_v12 = vld [vmem:[#allocation8 + $0xb4] ss:$8 sps:$4 sm:$0xff]   ;;  %v2569_v13 = vld [vmem:[#allocation8 + $0xb0] ss:$8 sps:$4 sm:$0xff]   ;;  %v621_v15 = vshrl.u32 %v620_v14, 7  ;;  %s2178_s19 = sshll.u32 %s3342_s25, 3 }
  0xa4   : > { %723 = vmatpush1.bf16.msra.mxu0 %v2481_v22  ;;  %972 = vmatpush1.bf16.msra.mxu1 %v2502_v30  ;;  %v618_v17 = vld [vmem:[%s3297_s2] sm:$0x3]  ;;  %s3336_s7 = sld [smem:[#allocation22_spill]]  ;;  %vm2035_vm0 = vcmask 7168  }
  0xa5   : > { %724 = vmatprep.subr.bf16.mxu0 %v2482_v25  ;;  %973 = vmatprep.subr.bf16.mxu1 %v2503_v31  ;;  %v3238_v16 = vsub.s32 0, %v621_v15  ;;  %v3243_v18 = vsub.s32 1, %v621_v15 }
  0xa7   : > { %v623_v19 = vrot.slane %v618_v17, %v3238_v16  ;;  %v627_v20 = vrot.slane %v618_v17, %v3243_v18  ;;  %v2622_v17 = vld [vmem:[#allocation10 + $0xa4] ss:$8 sps:$4 sm:$0xff]  }
  0xa8   : > { %725 = vmatpush1.bf16.msra.mxu0 %v2484_v26  ;;  %974 = vmatpush1.bf16.msra.mxu1 %v2505_v33  ;;  %v2574_v33 = vld [vmem:[#allocation8 + $0xa4] ss:$8 sps:$4 sm:$0xff]  }
  0xa9   : > { %975 = vmatprep.subr.bf16.mxu1 %v2506_v34  ;;  %1212 = vmatprep.subr.bf16.mxu0 %v2535_v53  ;;  %v2572_v34 = vld [vmem:[#allocation8 + $0xa0] ss:$8 sps:$4 sm:$0xff]   ;;  %v2604_v53 = vld [vmem:[#allocation10 + $0x4] ss:$8 sps:$4 sm:$0xff]  }
  0xaa   : > { %s598_s26 = scalar_lea.vmem %s3336_s7, %s2178_s19 }
  0xab   : > { %743 = vmatmul.mubr.bf16.vlgmr.msra.gmra.mxu0 %v601_v32 }
  0xac   : > { %976 = vmatpush1.bf16.msra.mxu1 %v2508_v35  ;;  %1213 = vmatpush1.bf16.msra.mxu0 %v2533_v52  ;;  %v2577_v35 = vld [vmem:[#allocation8 + $0x94] ss:$8 sps:$4 sm:$0xff]   ;;  %v2599_v52 = vld [vmem:[#allocation10 + $0x10] ss:$8 sps:$4 sm:$0xff]  }
  0xad   : > { %977 = vmatprep.subr.bf16.mxu1 %v2509_v36  ;;  %1214 = vmatprep.subr.bf16.mxu0 %v2538_v54  ;;  %v2575_v36 = vld [vmem:[#allocation8 + $0x90] ss:$8 sps:$4 sm:$0xff]   ;;  %v2602_v54 = vld [vmem:[#allocation10] ss:$8 sps:$4 sm:$0xff]  }
  0xb0   : > { %978 = vmatpush2.bf16.msra.mxu1 %v2511_v37  ;;  %1215 = vmatpush1.bf16.msra.mxu0 %v2536_v55  ;;  %v2580_v37 = vld [vmem:[#allocation8 + $0x84] ss:$8 sps:$4 sm:$0xff]   ;;  %v2607_v55 = vld [vmem:[#allocation10 + $0xf4] ss:$8 sps:$4 sm:$0xff]  }
  0xb1   : > { %979 = vmatprep.subr.bf16.mxu1 %v2512_v38  ;;  %1216 = vmatprep.subr.bf16.mxu0 %v2541_v56  ;;  %v2578_v38 = vld [vmem:[#allocation8 + $0x80] ss:$8 sps:$4 sm:$0xff]   ;;  %v2605_v56 = vld [vmem:[#allocation10 + $0xf0] ss:$8 sps:$4 sm:$0xff]  }
  0xb4   : > { %980 = vmatpush2.bf16.msra.mxu1 %v2514_v39  ;;  %1217 = vmatpush1.bf16.msra.mxu0 %v2539_v57  ;;  %v2581_v39 = vld [vmem:[#allocation10 + $0x70] ss:$8 sps:$4 sm:$0xff]   ;;  %v2610_v57 = vld [vmem:[#allocation10 + $0xe4] ss:$8 sps:$4 sm:$0xff]  }
  0xb5   : > { %981 = vmatprep.subr.bf16.mxu1 %v2515_v40  ;;  %1218 = vmatprep.subr.bf16.mxu0 %v2544_v58  ;;  %v2583_v40 = vld [vmem:[#allocation10 + $0x74] ss:$8 sps:$4 sm:$0xff]   ;;  %v2608_v58 = vld [vmem:[#allocation10 + $0xe0] ss:$8 sps:$4 sm:$0xff]  }
  0xb8   : > { %982 = vmatpush2.bf16.msra.mxu1 %v2517_v41  ;;  %1219 = vmatpush1.bf16.msra.mxu0 %v2542_v59  ;;  %v2586_v41 = vld [vmem:[#allocation10 + $0x64] ss:$8 sps:$4 sm:$0xff]   ;;  %v2613_v59 = vld [vmem:[#allocation10 + $0xd4] ss:$8 sps:$4 sm:$0xff]  }
  0xb9   : > { %983 = vmatprep.subr.bf16.mxu1 %v2518_v42  ;;  %1220 = vmatprep.subr.bf16.mxu0 %v2547_v60  ;;  %v2584_v42 = vld [vmem:[#allocation10 + $0x60] ss:$8 sps:$4 sm:$0xff]   ;;  %v2611_v60 = vld [vmem:[#allocation10 + $0xd0] ss:$8 sps:$4 sm:$0xff]  }
  0xbc   : > { %984 = vmatpush2.bf16.msra.mxu1 %v2520_v43  ;;  %1221 = vmatpush1.bf16.msra.mxu0 %v2545_v61  ;;  %v2589_v43 = vld [vmem:[#allocation10 + $0x54] ss:$8 sps:$4 sm:$0xff]   ;;  %v2616_v61 = vld [vmem:[#allocation10 + $0xc4] ss:$8 sps:$4 sm:$0xff]  }
  0xbd   : > { %985 = vmatprep.subr.bf16.mxu1 %v2521_v44  ;;  %1222 = vmatprep.subr.bf16.mxu0 %v2550_v62  ;;  %v2587_v44 = vld [vmem:[#allocation10 + $0x50] ss:$8 sps:$4 sm:$0xff]   ;;  %v2614_v62 = vld [vmem:[#allocation10 + $0xc0] ss:$8 sps:$4 sm:$0xff]  }
  0xc0   : > { %986 = vmatpush2.bf16.msra.mxu1 %v2523_v45  ;;  %1223 = vmatpush1.bf16.msra.mxu0 %v2548_v63  ;;  %v2592_v45 = vld [vmem:[#allocation10 + $0x44] ss:$8 sps:$4 sm:$0xff]   ;;  %v2619_v63 = vld [vmem:[#allocation10 + $0xb4] ss:$8 sps:$4 sm:$0xff]  }
  0xc1   : > { %987 = vmatprep.subr.bf16.mxu1 %v2524_v46  ;;  %1224 = vmatprep.subr.bf16.mxu0 %v2553_v0  ;;  %v2590_v46 = vld [vmem:[#allocation10 + $0x40] ss:$8 sps:$4 sm:$0xff]   ;;  %v2617_v0 = vld [vmem:[#allocation10 + $0xb0] ss:$8 sps:$4 sm:$0xff]  }
  0xc4   : > { %988 = vmatpush2.bf16.msra.mxu1 %v2526_v47  ;;  %1225 = vmatpush1.bf16.msra.mxu0 %v2551_v1  ;;  %v2595_v47 = vld [vmem:[#allocation10 + $0x34] ss:$8 sps:$4 sm:$0xff]   ;;  %v789_v1 = vld [vmem:[%s3299_s4] sm:$0x3] }
  0xc5   : > { %989 = vmatprep.subr.bf16.mxu1 %v2527_v48  ;;  %1226 = vmatprep.subr.bf16.mxu0 %v2556_v2  ;;  %v2593_v48 = vld [vmem:[#allocation10 + $0x30] ss:$8 sps:$4 sm:$0xff]   ;;  %v794_v2 = vrot.slane %v789_v1, %v3238_v16 }
  0xc8   : > { %990 = vmatpush2.bf16.msra.mxu1 %v2529_v49  ;;  %1227 = vmatpush1.bf16.msra.mxu0 %v2554_v3  ;;  %v2598_v49 = vld [vmem:[#allocation10 + $0x24] ss:$8 sps:$4 sm:$0xff]   ;;  %v798_v3 = vrot.slane %v789_v1, %v3243_v18 }
  0xc9   : > { %991 = vmatprep.subr.bf16.mxu1 %v2530_v50  ;;  %1228 = vmatprep.subr.bf16.mxu0 %v2559_v4  ;;  %v2596_v50 = vld [vmem:[#allocation10 + $0x20] ss:$8 sps:$4 sm:$0xff]   ;;  %v2670_v1 = vld [vmem:[#allocation11 + $0xa4] ss:$8 sps:$4 sm:$0xff]  }
  0xcc   : > { %992 = vmatpush2.bf16.msra.mxu1 %v2532_v51  ;;  %1229 = vmatpush2.bf16.msra.mxu0 %v2557_v5  ;;  %v2601_v51 = vld [vmem:[#allocation10 + $0x14] ss:$8 sps:$4 sm:$0xff]  }
  0xcd   : > { %1230 = vmatprep.subr.bf16.mxu0 %v2562_v6  ;;  %1463 = vmatprep.subr.bf16.mxu1 %v2583_v40  ;;  %v2655_v40 = vld [vmem:[#allocation11 + $0xf4] ss:$8 sps:$4 sm:$0xff]  }
  0xd0   : > { %1231 = vmatpush2.bf16.msra.mxu0 %v2560_v7 }
  0xd1   : > { %1232 = vmatprep.subr.bf16.mxu0 %v2565_v8 }
  0xd4   : > { %1233 = vmatpush2.bf16.msra.mxu0 %v2563_v9 }
  0xd5   : > { %1234 = vmatprep.subr.bf16.mxu0 %v2568_v10 }
  0xd8   : > { %1235 = vmatpush2.bf16.msra.mxu0 %v2566_v11 }
  0xd9   : > { %1236 = vmatprep.subr.bf16.mxu0 %v2571_v12 }
  0xdc   : > { %1237 = vmatpush2.bf16.msra.mxu0 %v2569_v13 }
  0xdd   : > { %1238 = vmatprep.subr.bf16.mxu0 %v2574_v33  ;;  %v2641_v33 = vld [vmem:[#allocation11 + $0x30] ss:$8 sps:$4 sm:$0xff]  }
  0xe0   : > { %1239 = vmatpush2.bf16.msra.mxu0 %v2572_v34  ;;  %v2646_v34 = vld [vmem:[#allocation11 + $0x24] ss:$8 sps:$4 sm:$0xff]  }
  0xe1   : > { %1240 = vmatprep.subr.bf16.mxu0 %v2577_v35  ;;  %v2644_v35 = vld [vmem:[#allocation11 + $0x20] ss:$8 sps:$4 sm:$0xff]  }
  0xe4   : > { %1241 = vmatpush2.bf16.msra.mxu0 %v2575_v36  ;;  %v2649_v36 = vld [vmem:[#allocation11 + $0x14] ss:$8 sps:$4 sm:$0xff]  }
  0xe5   : > { %1242 = vmatprep.subr.bf16.mxu0 %v2580_v37  ;;  %v2647_v37 = vld [vmem:[#allocation11 + $0x10] ss:$8 sps:$4 sm:$0xff]  }
  0xe8   : > { %1243 = vmatpush2.bf16.msra.mxu0 %v2578_v38  ;;  %v2652_v38 = vld [vmem:[#allocation11 + $0x4] ss:$8 sps:$4 sm:$0xff]  }
 0x16b   : > { %v744_v21 = vpop.f32.mrf.mxu0 }
 0x16c   : > { %v745_v22 = vadd.f32 %v744_v21, %v623_v19  ;;  %v2620_v19 = vld [vmem:[#allocation10 + $0xa0] ss:$8 sps:$4 sm:$0xff]   ;;  %v2623_v21 = vld [vmem:[#allocation10 + $0x90] ss:$8 sps:$4 sm:$0xff]  }
 0x16d   : > { %v746_v23 = vpop.f32.mrf.mxu0 }
 0x16e   : > { %v751_v24 = vmul.f32 0.01, %v745_v22  ;;  %v747_v25 = vadd.f32 %v746_v23, %v627_v20  ;;  %v2625_v20 = vld [vmem:[#allocation10 + $0x94] ss:$8 sps:$4 sm:$0xff]   ;;  %v2626_v23 = vld [vmem:[#allocation10 + $0x80] ss:$8 sps:$4 sm:$0xff]  }
 0x16f   : > { %v748_v26 = vpop.f32.mrf.mxu0 }
 0x170   : > { %v752_v27 = vmul.f32 0.01, %v747_v25  ;;  %v753_v28 = vmax.f32 %v745_v22, %v751_v24  ;;  %v2628_v22 = vld [vmem:[#allocation10 + $0x84] ss:$8 sps:$4 sm:$0xff]   ;;  %v2629_v24 = vld [vmem:[#allocation11 + $0x70] ss:$8 sps:$4 sm:$0xff]  }
 0x171   : > { %v749_v29 = vpop.f32.mrf.mxu0  ;;  %v2634_v26 = vld [vmem:[#allocation11 + $0x64] ss:$8 sps:$4 sm:$0xff]  }
 0x172   : > { %v754_v30 = vmax.f32 %v747_v25, %v752_v27  ;;  %v755_v32 = vpack.c.bf16 %v753_v28, %v753_v28  ;;  %v2631_v25 = vld [vmem:[#allocation11 + $0x74] ss:$8 sps:$4 sm:$0xff]   ;;  %v2632_v27 = vld [vmem:[#allocation11 + $0x60] ss:$8 sps:$4 sm:$0xff]   ;;  %v2635_v29 = vld [vmem:[#allocation11 + $0x50] ss:$8 sps:$4 sm:$0xff]  }
 0x173   : > { %1714 = vmatprep.subr.bf16.mxu0 %v2631_v25  ;;  %v2637_v28 = vld [vmem:[#allocation11 + $0x54] ss:$8 sps:$4 sm:$0xff]  }
 0x174   : > { %v756_v31 = vpack.c.bf16 %v754_v30, %v754_v30  ;;  %v2640_v30 = vld [vmem:[#allocation11 + $0x44] ss:$8 sps:$4 sm:$0xff]   ;;  %v2703_v25 = vld [vmem:[#allocation13 + $0xf4] ss:$8 sps:$4 sm:$0xff]  }
 0x176   : > { %993 = vmatprep.mubr.bf16.mxu1 %v756_v31  ;;  %v2638_v31 = vld [vmem:[#allocation11 + $0x40] ss:$8 sps:$4 sm:$0xff]  }
 0x177   : > { %994 = vmatmul.mubr.bf16.vlgmr.msra.gmra.mxu1 %v755_v32  ;;  %v2643_v32 = vld [vmem:[#allocation11 + $0x34] ss:$8 sps:$4 sm:$0xff]  }
 0x178   : > { %1464 = vmatpush1.bf16.msra.mxu1 %v2581_v39  ;;  %v2650_v39 = vld [vmem:[#allocation11] ss:$8 sps:$4 sm:$0xff]  }
 0x179   : > { %1465 = vmatprep.subr.bf16.mxu1 %v2586_v41  ;;  %v2653_v41 = vld [vmem:[#allocation11 + $0xf0] ss:$8 sps:$4 sm:$0xff]  }
 0x17c   : > { %1466 = vmatpush1.bf16.msra.mxu1 %v2584_v42  ;;  %v2658_v42 = vld [vmem:[#allocation11 + $0xe4] ss:$8 sps:$4 sm:$0xff]  }
 0x17d   : > { %1467 = vmatprep.subr.bf16.mxu1 %v2589_v43  ;;  %v2656_v43 = vld [vmem:[#allocation11 + $0xe0] ss:$8 sps:$4 sm:$0xff]  }
 0x180   : > { %1468 = vmatpush1.bf16.msra.mxu1 %v2587_v44  ;;  %v2661_v44 = vld [vmem:[#allocation11 + $0xd4] ss:$8 sps:$4 sm:$0xff]  }
 0x181   : > { %1469 = vmatprep.subr.bf16.mxu1 %v2592_v45  ;;  %v2659_v45 = vld [vmem:[#allocation11 + $0xd0] ss:$8 sps:$4 sm:$0xff]  }
 0x184   : > { %1470 = vmatpush1.bf16.msra.mxu1 %v2590_v46  ;;  %v2664_v46 = vld [vmem:[#allocation11 + $0xc4] ss:$8 sps:$4 sm:$0xff]  }
 0x185   : > { %1471 = vmatprep.subr.bf16.mxu1 %v2595_v47  ;;  %v2662_v47 = vld [vmem:[#allocation11 + $0xc0] ss:$8 sps:$4 sm:$0xff]  }
 0x188   : > { %1472 = vmatpush1.bf16.msra.mxu1 %v2593_v48  ;;  %v2667_v48 = vld [vmem:[#allocation11 + $0xb4] ss:$8 sps:$4 sm:$0xff]  }
 0x189   : > { %1473 = vmatprep.subr.bf16.mxu1 %v2598_v49  ;;  %v2665_v49 = vld [vmem:[#allocation11 + $0xb0] ss:$8 sps:$4 sm:$0xff]  }
 0x18c   : > { %1474 = vmatpush1.bf16.msra.mxu1 %v2596_v50  ;;  %v1040_v50 = vld [vmem:[%s3301_s6] sm:$0x3] }
 0x18d   : > { %1475 = vmatprep.subr.bf16.mxu1 %v2601_v51  ;;  %v1045_v51 = vrot.slane %v1040_v50, %v3238_v16 }
 0x190   : > { %1476 = vmatpush1.bf16.msra.mxu1 %v2599_v52  ;;  %v1049_v52 = vrot.slane %v1040_v50, %v3243_v18  ;;  %v2718_v50 = vld [vmem:[#allocation13 + $0xa4] ss:$8 sps:$4 sm:$0xff]  }
 0x191   : > { %1477 = vmatprep.subr.bf16.mxu1 %v2604_v53 }
 0x194   : > { %1478 = vmatpush1.bf16.msra.mxu1 %v2602_v54 }
 0x195   : > { %1479 = vmatprep.subr.bf16.mxu1 %v2607_v55 }
 0x198   : > { %1480 = vmatpush2.bf16.msra.mxu1 %v2605_v56 }
 0x199   : > { %1481 = vmatprep.subr.bf16.mxu1 %v2610_v57 }
 0x19c   : > { %1482 = vmatpush2.bf16.msra.mxu1 %v2608_v58 }
 0x19d   : > { %1483 = vmatprep.subr.bf16.mxu1 %v2613_v59 }
 0x1a0   : > { %1484 = vmatpush2.bf16.msra.mxu1 %v2611_v60 }
 0x1a1   : > { %1485 = vmatprep.subr.bf16.mxu1 %v2616_v61 }
 0x1a4   : > { %1486 = vmatpush2.bf16.msra.mxu1 %v2614_v62 }
 0x1a5   : > { %1487 = vmatprep.subr.bf16.mxu1 %v2619_v63 }
 0x1a8   : > { %1488 = vmatpush2.bf16.msra.mxu1 %v2617_v0 }
 0x1a9   : > { %1489 = vmatprep.subr.bf16.mxu1 %v2622_v17  ;;  %v2689_v17 = vld [vmem:[#allocation13 + $0x30] ss:$8 sps:$4 sm:$0xff]  }
 0x1ac   : > { %1490 = vmatpush2.bf16.msra.mxu1 %v2620_v19  ;;  %v2694_v19 = vld [vmem:[#allocation13 + $0x24] ss:$8 sps:$4 sm:$0xff]  }
 0x1ad   : > { %1491 = vmatprep.subr.bf16.mxu1 %v2625_v20  ;;  %v2692_v20 = vld [vmem:[#allocation13 + $0x20] ss:$8 sps:$4 sm:$0xff]  }
 0x1b0   : > { %1492 = vmatpush2.bf16.msra.mxu1 %v2623_v21  ;;  %v2697_v21 = vld [vmem:[#allocation13 + $0x14] ss:$8 sps:$4 sm:$0xff]  }
 0x1b1   : > { %1493 = vmatprep.subr.bf16.mxu1 %v2628_v22  ;;  %v2695_v22 = vld [vmem:[#allocation13 + $0x10] ss:$8 sps:$4 sm:$0xff]  }
 0x1b4   : > { %1494 = vmatpush2.bf16.msra.mxu1 %v2626_v23  ;;  %v2700_v23 = vld [vmem:[#allocation13 + $0x4] ss:$8 sps:$4 sm:$0xff]  }
 0x237   : > { %v995_v4 = vpop.f32.mrf.mxu1 }
 0x238   : > { %v996_v5 = vadd.f32 %v995_v4, %v794_v2  ;;  %v2668_v2 = vld [vmem:[#allocation11 + $0xa0] ss:$8 sps:$4 sm:$0xff]   ;;  %v2671_v4 = vld [vmem:[#allocation11 + $0x90] ss:$8 sps:$4 sm:$0xff]  }
 0x239   : > { %v997_v6 = vpop.f32.mrf.mxu1 }
 0x23a   : > { %v1002_v7 = vmul.f32 0.01, %v996_v5  ;;  %v998_v8 = vadd.f32 %v997_v6, %v798_v3  ;;  %v2673_v3 = vld [vmem:[#allocation11 + $0x94] ss:$8 sps:$4 sm:$0xff]   ;;  %v2674_v6 = vld [vmem:[#allocation11 + $0x80] ss:$8 sps:$4 sm:$0xff]  }
 0x23b   : > { %v999_v9 = vpop.f32.mrf.mxu1 }
 0x23c   : > { %v1003_v10 = vmul.f32 0.01, %v998_v8  ;;  %v1004_v11 = vmax.f32 %v996_v5, %v1002_v7  ;;  %v2676_v5 = vld [vmem:[#allocation11 + $0x84] ss:$8 sps:$4 sm:$0xff]   ;;  %v2677_v7 = vld [vmem:[#allocation13 + $0x70] ss:$8 sps:$4 sm:$0xff]  }
 0x23d   : > { %v1000_v12 = vpop.f32.mrf.mxu1  ;;  %v2682_v9 = vld [vmem:[#allocation13 + $0x64] ss:$8 sps:$4 sm:$0xff]  }
 0x23e   : > { %v1005_v13 = vmax.f32 %v998_v8, %v1003_v10  ;;  %v1006_v15 = vpack.c.bf16 %v1004_v11, %v1004_v11  ;;  %v2679_v8 = vld [vmem:[#allocation13 + $0x74] ss:$8 sps:$4 sm:$0xff]   ;;  %v2680_v10 = vld [vmem:[#allocation13 + $0x60] ss:$8 sps:$4 sm:$0xff]   ;;  %v2683_v12 = vld [vmem:[#allocation13 + $0x50] ss:$8 sps:$4 sm:$0xff]  }
 0x23f   : > { %1965 = vmatprep.subr.bf16.mxu1 %v2679_v8  ;;  %v2685_v11 = vld [vmem:[#allocation13 + $0x54] ss:$8 sps:$4 sm:$0xff]  }
 0x240   : > { %v1007_v14 = vpack.c.bf16 %v1005_v13, %v1005_v13  ;;  %v2688_v13 = vld [vmem:[#allocation13 + $0x44] ss:$8 sps:$4 sm:$0xff]  }
 0x242   : > { %1244 = vmatprep.mubr.bf16.mxu0 %v1007_v14  ;;  %v2686_v14 = vld [vmem:[#allocation13 + $0x40] ss:$8 sps:$4 sm:$0xff]  }
 0x243   : > { %1245 = vmatmul.mubr.bf16.vlgmr.msra.gmra.mxu0 %v1006_v15  ;;  %v2691_v15 = vld [vmem:[#allocation13 + $0x34] ss:$8 sps:$4 sm:$0xff]  }
 0x244   : > { %1715 = vmatpush1.bf16.msra.mxu0 %v2629_v24  ;;  %v2698_v24 = vld [vmem:[#allocation13] ss:$8 sps:$4 sm:$0xff]  }
 0x245   : > { %1716 = vmatprep.subr.bf16.mxu0 %v2634_v26  ;;  %v2701_v26 = vld [vmem:[#allocation13 + $0xf0] ss:$8 sps:$4 sm:$0xff]  }
 0x248   : > { %1717 = vmatpush1.bf16.msra.mxu0 %v2632_v27  ;;  %v2706_v27 = vld [vmem:[#allocation13 + $0xe4] ss:$8 sps:$4 sm:$0xff]  }
 0x249   : > { %1718 = vmatprep.subr.bf16.mxu0 %v2637_v28  ;;  %v2704_v28 = vld [vmem:[#allocation13 + $0xe0] ss:$8 sps:$4 sm:$0xff]  }
 0x24c   : > { %1719 = vmatpush1.bf16.msra.mxu0 %v2635_v29  ;;  %v2709_v29 = vld [vmem:[#allocation13 + $0xd4] ss:$8 sps:$4 sm:$0xff]  }
 0x24d   : > { %1720 = vmatprep.subr.bf16.mxu0 %v2640_v30  ;;  %v2707_v30 = vld [vmem:[#allocation13 + $0xd0] ss:$8 sps:$4 sm:$0xff]  }
 0x250   : > { %1721 = vmatpush1.bf16.msra.mxu0 %v2638_v31  ;;  %v2712_v31 = vld [vmem:[#allocation13 + $0xc4] ss:$8 sps:$4 sm:$0xff]  }
 0x251   : > { %1722 = vmatprep.subr.bf16.mxu0 %v2643_v32  ;;  %v2710_v32 = vld [vmem:[#allocation13 + $0xc0] ss:$8 sps:$4 sm:$0xff]  }
 0x254   : > { %1723 = vmatpush1.bf16.msra.mxu0 %v2641_v33  ;;  %v2715_v33 = vld [vmem:[#allocation13 + $0xb4] ss:$8 sps:$4 sm:$0xff]  }
 0x255   : > { %1724 = vmatprep.subr.bf16.mxu0 %v2646_v34  ;;  %v2713_v34 = vld [vmem:[#allocation13 + $0xb0] ss:$8 sps:$4 sm:$0xff]  }
 0x258   : > { %1725 = vmatpush1.bf16.msra.mxu0 %v2644_v35  ;;  %v1291_v35 = vld [vmem:[%s3303_s8] sm:$0x3] }
 0x259   : > { %1726 = vmatprep.subr.bf16.mxu0 %v2649_v36  ;;  %v1296_v36 = vrot.slane %v1291_v35, %v3238_v16 }
 0x25c   : > { %1727 = vmatpush1.bf16.msra.mxu0 %v2647_v37  ;;  %v1300_v37 = vrot.slane %v1291_v35, %v3243_v18 }
 0x25d   : > { %1728 = vmatprep.subr.bf16.mxu0 %v2652_v38 }
 0x260   : > { %1729 = vmatpush1.bf16.msra.mxu0 %v2650_v39 }
 0x261   : > { %1730 = vmatprep.subr.bf16.mxu0 %v2655_v40 }
 0x264   : > { %1731 = vmatpush2.bf16.msra.mxu0 %v2653_v41 }
 0x265   : > { %1732 = vmatprep.subr.bf16.mxu0 %v2658_v42 }
 0x268   : > { %1733 = vmatpush2.bf16.msra.mxu0 %v2656_v43 }
 0x269   : > { %1734 = vmatprep.subr.bf16.mxu0 %v2661_v44 }
 0x26c   : > { %1735 = vmatpush2.bf16.msra.mxu0 %v2659_v45 }
 0x26d   : > { %1736 = vmatprep.subr.bf16.mxu0 %v2664_v46 }
 0x270   : > { %1737 = vmatpush2.bf16.msra.mxu0 %v2662_v47 }
 0x271   : > { %1738 = vmatprep.subr.bf16.mxu0 %v2667_v48 }
 0x274   : > { %1739 = vmatpush2.bf16.msra.mxu0 %v2665_v49 }
 0x275   : > { %1740 = vmatprep.subr.bf16.mxu0 %v2670_v1 }
 0x278   : > { %1741 = vmatpush2.bf16.msra.mxu0 %v2668_v2 }
 0x279   : > { %1742 = vmatprep.subr.bf16.mxu0 %v2673_v3 }
 0x27c   : > { %1743 = vmatpush2.bf16.msra.mxu0 %v2671_v4 }
 0x27d   : > { %1744 = vmatprep.subr.bf16.mxu0 %v2676_v5 }
 0x280   : > { %1745 = vmatpush2.bf16.msra.mxu0 %v2674_v6 }
 0x303   : > { %v1246_v53 = vpop.f32.mrf.mxu0 }
 0x304   : > { %v1247_v54 = vadd.f32 %v1246_v53, %v1045_v51  ;;  %v2716_v51 = vld [vmem:[#allocation13 + $0xa0] ss:$8 sps:$4 sm:$0xff]   ;;  %v2719_v53 = vld [vmem:[#allocation13 + $0x90] ss:$8 sps:$4 sm:$0xff]  }
 0x305   : > { %v1248_v55 = vpop.f32.mrf.mxu0 }
 0x306   : > { %v1253_v56 = vmul.f32 0.01, %v1247_v54  ;;  %v1249_v57 = vadd.f32 %v1248_v55, %v1049_v52  ;;  %v2721_v52 = vld [vmem:[#allocation13 + $0x94] ss:$8 sps:$4 sm:$0xff]   ;;  %v2722_v55 = vld [vmem:[#allocation13 + $0x80] ss:$8 sps:$4 sm:$0xff]  }
 0x307   : > { %v1250_v58 = vpop.f32.mrf.mxu0 }
 0x308   : > { %v1254_v59 = vmul.f32 0.01, %v1249_v57  ;;  %v1255_v60 = vmax.f32 %v1247_v54, %v1253_v56  ;;  %v2724_v54 = vld [vmem:[#allocation13 + $0x84] ss:$8 sps:$4 sm:$0xff]  }
 0x309   : > { %v1251_v61 = vpop.f32.mrf.mxu0  ;;  %v1542_v56 = vld [vmem:[%s3305_s10] sm:$0x3] }
 0x30a   : > { %v1256_v62 = vmax.f32 %v1249_v57, %v1254_v59  ;;  %v1257_v0 = vpack.c.bf16 %v1255_v60, %v1255_v60  ;;  %v1547_v57 = vrot.slane %v1542_v56, %v3238_v16  ;;  %v1551_v58 = vrot.slane %v1542_v56, %v3243_v18 }
 0x30c   : > { %v1258_v63 = vpack.c.bf16 %v1256_v62, %v1256_v62 }
 0x30e   : > { %1495 = vmatprep.mubr.bf16.mxu1 %v1258_v63 }
 0x30f   : > { %1496 = vmatmul.mubr.bf16.vlgmr.msra.gmra.mxu1 %v1257_v0 }
 0x310   : > { %1966 = vmatpush1.bf16.msra.mxu1 %v2677_v7  ;;  %v1793_v7 = vld [vmem:[%s3307_s12] sm:$0x3] }
 0x311   : > { %1967 = vmatprep.subr.bf16.mxu1 %v2682_v9  ;;  %v1798_v8 = vrot.slane %v1793_v7, %v3238_v16  ;;  %v1802_v9 = vrot.slane %v1793_v7, %v3243_v18 }
 0x314   : > { %1968 = vmatpush1.bf16.msra.mxu1 %v2680_v10 }
 0x315   : > { %1969 = vmatprep.subr.bf16.mxu1 %v2685_v11 }
 0x318   : > { %1970 = vmatpush1.bf16.msra.mxu1 %v2683_v12 }
 0x319   : > { %1971 = vmatprep.subr.bf16.mxu1 %v2688_v13  ;;  %v2010_v13 = vld [vmem:[%s3308_s13] sm:$0x3] }
 0x31c   : > { %1972 = vmatpush1.bf16.msra.mxu1 %v2686_v14 }
 0x31d   : > { %1973 = vmatprep.subr.bf16.mxu1 %v2691_v15 }
 0x320   : > { %1974 = vmatpush1.bf16.msra.mxu1 %v2689_v17 }
 0x321   : > { %1975 = vmatprep.subr.bf16.mxu1 %v2694_v19 }
 0x324   : > { %1976 = vmatpush1.bf16.msra.mxu1 %v2692_v20 }
 0x325   : > { %1977 = vmatprep.subr.bf16.mxu1 %v2697_v21  ;;  %v2015_v21 = vrot.slane %v2010_v13, %v3238_v16 }
 0x328   : > { %1978 = vmatpush1.bf16.msra.mxu1 %v2695_v22  ;;  %v2019_v22 = vrot.slane %v2010_v13, %v3243_v18 }
 0x329   : > { %1979 = vmatprep.subr.bf16.mxu1 %v2700_v23 }
 0x32c   : > { %1980 = vmatpush1.bf16.msra.mxu1 %v2698_v24 }
 0x32d   : > { %1981 = vmatprep.subr.bf16.mxu1 %v2703_v25 }
 0x330   : > { %1982 = vmatpush2.bf16.msra.mxu1 %v2701_v26 }
 0x331   : > { %1983 = vmatprep.subr.bf16.mxu1 %v2706_v27 }
 0x334   : > { %1984 = vmatpush2.bf16.msra.mxu1 %v2704_v28  ;;  %v2355_v28 = vld [vmem:[#allocation2] ss:$0 sm:$0xff] }
 0x335   : > { %1985 = vmatprep.subr.bf16.mxu1 %v2709_v29 }
 0x338   : > { %1986 = vmatpush2.bf16.msra.mxu1 %v2707_v30 }
 0x339   : > { %1987 = vmatprep.subr.bf16.mxu1 %v2712_v31 }
 0x33c   : > { %1988 = vmatpush2.bf16.msra.mxu1 %v2710_v32 }
 0x33d   : > { %1989 = vmatprep.subr.bf16.mxu1 %v2715_v33 }
 0x340   : > { %1990 = vmatpush2.bf16.msra.mxu1 %v2713_v34 }
 0x341   : > { %1991 = vmatprep.subr.bf16.mxu1 %v2718_v50 }
 0x344   : > { %1992 = vmatpush2.bf16.msra.mxu1 %v2716_v51 }
 0x345   : > { %1993 = vmatprep.subr.bf16.mxu1 %v2721_v52 }
 0x348   : > { %1994 = vmatpush2.bf16.msra.mxu1 %v2719_v53 }
 0x349   : > { %1995 = vmatprep.subr.bf16.mxu1 %v2724_v54 }
 0x34c   : > { %1996 = vmatpush2.bf16.msra.mxu1 %v2722_v55 }
 0x3cf   : > { %v1497_v38 = vpop.f32.mrf.mxu1 }
 0x3d0   : > { %v1498_v39 = vadd.f32 %v1497_v38, %v1296_v36 }
 0x3d1   : > { %v1499_v40 = vpop.f32.mrf.mxu1 }
 0x3d2   : > { %v1504_v41 = vmul.f32 0.01, %v1498_v39  ;;  %v1500_v42 = vadd.f32 %v1499_v40, %v1300_v37 }
 0x3d3   : > { %v1501_v43 = vpop.f32.mrf.mxu1 }
 0x3d4   : > { %v1505_v44 = vmul.f32 0.01, %v1500_v42  ;;  %v1506_v45 = vmax.f32 %v1498_v39, %v1504_v41 }
 0x3d5   : > { %v1502_v46 = vpop.f32.mrf.mxu1 }
 0x3d6   : > { %v1507_v47 = vmax.f32 %v1500_v42, %v1505_v44  ;;  %v1508_v49 = vpack.c.bf16 %v1506_v45, %v1506_v45 }
 0x3d8   : > { %v1509_v48 = vpack.c.bf16 %v1507_v47, %v1507_v47 }
 0x3da   : > { %1746 = vmatprep.mubr.bf16.mxu0 %v1509_v48 }
 0x3db   : > { %1747 = vmatmul.mubr.bf16.vlgmr.msra.gmra.mxu0 %v1508_v49 }
 0x49b   : > { %v1748_v59 = vpop.f32.mrf.mxu0 }
 0x49c   : > { %v1749_v60 = vadd.f32 %v1748_v59, %v1547_v57 }
 0x49d   : > { %v1750_v61 = vpop.f32.mrf.mxu0 }
 0x49e   : > { %v1755_v62 = vmul.f32 0.01, %v1749_v60  ;;  %v1751_v63 = vadd.f32 %v1750_v61, %v1551_v58 }
 0x49f   : > { %v1752_v0 = vpop.f32.mrf.mxu0 }
 0x4a0   : > { %v1756_v1 = vmul.f32 0.01, %v1751_v63  ;;  %v1757_v2 = vmax.f32 %v1749_v60, %v1755_v62 }
 0x4a1   : > { %v1753_v3 = vpop.f32.mrf.mxu0 }
 0x4a2   : > { %v1758_v4 = vmax.f32 %v1751_v63, %v1756_v1  ;;  %v1759_v6 = vpack.c.bf16 %v1757_v2, %v1757_v2 }
 0x4a4   : > { %v1760_v5 = vpack.c.bf16 %v1758_v4, %v1758_v4 }
 0x4a6   : > { %1997 = vmatprep.mubr.bf16.mxu1 %v1760_v5 }
 0x4a7   : > { %1998 = vmatmul.mubr.bf16.vlgmr.msra.gmra.mxu1 %v1759_v6 }
 0x567   : > { %v1999_v10 = vpop.f32.mrf.mxu1 }
 0x568   : > { %v2000_v11 = vadd.f32 %v1999_v10, %v1798_v8 }
 0x569   : > { %v2001_v12 = vpop.f32.mrf.mxu1 }
 0x56a   : > { %v2006_v14 = vmul.f32 0.01, %v2000_v11  ;;  %v2002_v15 = vadd.f32 %v2001_v12, %v1802_v9 }
 0x56b   : > { %v2003_v17 = vpop.f32.mrf.mxu1 }
 0x56c   : > { %v2008_v19 = vmax.f32 %v2000_v11, %v2006_v14  ;;  %v2007_v20 = vmul.f32 0.01, %v2002_v15 }
 0x56d   : > { %v2004_v23 = vpop.f32.mrf.mxu1 }
 0x56e   : > { %v2009_v24 = vmax.f32 %v2002_v15, %v2007_v20  ;;  %v2022_v25 = vmul.f32 %v2015_v21, %v2008_v19 }
 0x570   : > { %v2023_v26 = vmul.f32 %v2019_v22, %v2009_v24 }
 0x572   : > { %v2024_v27 = vadd.f32 %v2023_v26, %v2022_v25 }
 0x574   : > { %2025 = vadd.xlane.f32.xlu0 %v2024_v27 }
 0x5fd   : > { %v2026_v29 = vpop.xlane.xlu0 %2025 }
 0x5fe   : > { %v2034_v30 = vadd.f32 %v2355_v28, %v2026_v29 }
 0x600   : > { %2036 = vst.msk [vmem:[%s598_s26] sm:$0xff] %vm2035_vm0, %v2034_v30 }
 0x601 PF: > { %p30_p11 = scmp.ge.s32.totalorder %s3169_s29, 4   ;;  %s3337_s20 = smov %s2947_s21 }
 0x602   : > { %s3338_s21 = smov %s2951_s22  ;;  %s3339_s22 = smov %s3181_s28 }
 0x603   : > { %s3340_s23 = smov %s3169_s29  ;;  %32 = sbr.rel (!%p30_p11) target bundleno = 12 (0xc), region = 144 }
 0x608   :  { %2056 = vsyncpa [#allocation4], 1 }
 0x609   :  { %2058 = vsyncpa [#allocation4 + $0x1], 1 }
 0x60a   :  { %2059 = vsyncpa [#allocation6], 1 }
 0x60b   :  { %2060 = vsyncpa [#allocation9], 1 }
 0x60c   :  { %2061 = vsyncpa [#allocation12], 1 }

// kernel: tpu_custom_call.1
= control target key start
LH: loop header
LB: loop body
LE: loop exit
PB: predicated region body
PF: predicated region fallthrough
CT: control target
= control target key end

     0   :  { %s3295_s0 = inlined_call_operand.hbm [shape: f32[16,128], index: 0, kind: input, shape index: {}]   ;;  %s3296_s1 = inlined_call_operand.hbm [shape: bf16[128,256], index: 1, kind: input, shape index: {}]   ;;  %s3297_s2 = inlined_call_operand.vmem [shape: f32[1,256], index: 2, kind: input, shape index: {}]   ;;  %s3298_s3 = inlined_call_operand.hbm [shape: bf16[256,256], index: 3, kind: input, shape index: {}]   ;;  %s3299_s4 = inlined_call_operand.vmem [shape: f32[1,256], index: 4, kind: input, shape index: {}]   ;;  %s3300_s5 = inlined_call_operand.hbm [shape: bf16[256,256], index: 5, kind: input, shape index: {}]   ;;  %s3301_s6 = inlined_call_operand.vmem [shape: f32[1,256], index: 6, kind: input, shape index: {}]   ;;  %s3302_s7 = inlined_call_operand.hbm [shape: bf16[256,256], index: 7, kind: input, shape index: {}]   ;;  %s3303_s8 = inlined_call_operand.vmem [shape: f32[1,256], index: 8, kind: input, shape index: {}]   ;;  %s3304_s9 = inlined_call_operand.hbm [shape: bf16[256,256], index: 9, kind: input, shape index: {}]   ;;  %s3305_s10 = inlined_call_operand.vmem [shape: f32[1,256], index: 10, kind: input, shape index: {}]   ;;  %s3306_s11 = inlined_call_operand.hbm [shape: bf16[256,256], index: 11, kind: input, shape index: {}]   ;;  %s3307_s12 = inlined_call_operand.vmem [shape: f32[1,256], index: 12, kind: input, shape index: {}]   ;;  %s3308_s13 = inlined_call_operand.vmem [shape: f32[1,256], index: 13, kind: input, shape index: {}]   ;;  %s3309_s14 = inlined_call_operand.<no memory space> [shape: f32[1,1], index: 14, kind: input, shape index: {}]   ;;  %s3310_s15 = inlined_call_operand.vmem [shape: f32[16,1], index: 15, kind: output, shape index: {}]  }
   0x1   :  { %3314 = sst [smem:[#allocation18_spill]] %s3296_s1  ;;  %v20_v0 = vstv %s3309_s14 }
   0x2   :  { %3315 = sst [smem:[#allocation19_spill]] %s3298_s3  ;;  %21 = vst [vmem:[#allocation2] sm:$0x1] %v20_v0 }
   0x3   :  { %3316 = sst [smem:[#allocation20_spill]] %s3300_s5 }
   0x4   :  { %3317 = sst [smem:[#allocation21_spill]] %s3302_s7 }
   0x5   :  { %3318 = sst [smem:[#allocation22_spill]] %s3310_s15 }
   0x6   :  { %22 = vsyncpa [#allocation4], 0 }
   0x7   :  { %24 = vsyncpa [#allocation4 + $0x1], 0 }
   0x8   :  { %25 = vsyncpa [#allocation6], 0 }
   0x9   :  { %26 = vsyncpa [#allocation9], 0 }
   0xa   :  { %27 = vsyncpa [#allocation12], 0  ;;  %s3050_s20 = smov 0   ;;  %s3052_s21 = smov 0  }
   0xb   :  { %s3054_s22 = smov 0   ;;  %s3056_s23 = smov 0  }
   0xc LB: > { %s2957_s14 = smov [#allocation5]   ;;  %s3071_s25 = sadd.s32 4294967295, %s2955_s23   ;;  %s2955_s23 = sphi %s3056_s23, %s3340_s23   ;;  %s2951_s22 = sphi %s3054_s22, %s3339_s22   ;;  %s2947_s21 = sphi %s3052_s21, %s3338_s21   ;;  %s2943_s20 = sphi %s3050_s20, %s3337_s20  }
   0xd   : > { %s396_s24 = sshll.u32 %s2957_s14, 4  ;;  %p2160_p0 = scmp.ge.s32.totalorder %s2955_s23, 1  ;;  %s397_s24 = int_to_ptr.vmem [resolvable:$true] %s396_s24 }
   0xe   : > { %p3311_p1 = scmp.eq.s32.totalorder %s3071_s25, 0  ;;  %p384_p2 = scmp.lt.s32.totalorder %s2955_s23, 3 }
   0xf   : > { %s2958_s27 = smov [#allocation8]   ;;  %s2959_s30 = smov [#allocation11]  }
  0x10   : > { %p3076_p3 = pnand %p2160_p0, %p384_p2  ;;  %s428_s28 = sshll.u32 %s2958_s27, 4  ;;  %s3088_s28 = int_to_ptr.vmem [resolvable:$true] %s428_s28 }
  0x11   : > { %s460_s16 = sshll.u32 %s2959_s30, 4  ;;  %s2736_s18 = scalar_lea.vmem %s397_s24, 2048  ;;  %s3090_s16 = int_to_ptr.vmem [resolvable:$true] %s460_s16 }
  0x12   : > { %s3319_s26 = scalar_select %p3076_p3, 1, 0 }
  0x13   : > { %p2384_p4 = pneg %p3076_p3  ;;  %p2737_p7 = scmp.ne.s32.totalorder %s397_s24, %s2736_s18 }
  0x14   : > { %p2744_p10 = scmp.lt.s32.totalorder %s397_s24, %s397_s24  ;;  %p2745_p11 = scmp.lt.s32.totalorder %s2736_s18, %s2736_s18 }
  0x15   : > { %p3084_p5 = pnand %p2384_p4, %p3311_p1 }
  0x16   : > { %p2746_p12 = por %p2745_p11, %p2744_p10 }
  0x17   : > { %p3094_p6 = pneg %p3084_p5 }
  0x19   : > { %p2739_p8 = pnand %p2737_p7, %p3094_p6 }
  0x1b   : > { %p2740_p9 = pneg %p2739_p8 }
  0x1d   : > { %p2747_p13 = pnand %p2746_p12, %p2740_p9 }
  0x1f   : > { %2750 = shalt.err (!%p2747_p13)
}
  0x20   : > { %s2960_s19 = smov 128   ;;  %s2961_s14 = smov 8  }
  0x21   : > { %s3322_s1 = sld [smem:[#allocation18_spill]]  ;;  %s2762_s15 = scalar_lea.vmem %s3088_s28, 4096 }
  0x22   : > { %p2763_p0 = scmp.ne.s32.totalorder %s3088_s28, %s2762_s15  ;;  %p2770_p7 = scmp.lt.s32.totalorder %s3088_s28, %s3088_s28 }
  0x23   : > { %p2771_p8 = scmp.lt.s32.totalorder %s2762_s15, %s2762_s15 }
  0x24   : > { %p2765_p2 = pnand %p2763_p0, %p3094_p6 }
  0x25   : > { %p2772_p9 = por %p2771_p8, %p2770_p7 }
  0x26   : > { %p2766_p4 = pneg %p2765_p2 }
  0x27   : > { %2387 = dma.hbm_to_vmem [thread:$0]  (!%p3084_p5), %s3322_s1, 2048, %s397_s24, [#allocation6], %s2960_s19, %s2960_s19, %s2961_s14  }
  0x28   : > { %p2773_p10 = pnand %p2772_p9, %p2766_p4 }
  0x2a   : > { %2776 = shalt.err (!%p2773_p10)
}
  0x2b   : > { %s3323_s5 = sld [smem:[#allocation20_spill]]  ;;  %s2788_s24 = scalar_lea.vmem %s3090_s16, 4096 }
  0x2c   : > { %p2789_p11 = scmp.ne.s32.totalorder %s3090_s16, %s2788_s24  ;;  %p2796_p0 = scmp.lt.s32.totalorder %s3090_s16, %s3090_s16 }
  0x2d   : > { %p2797_p2 = scmp.lt.s32.totalorder %s2788_s24, %s2788_s24 }
  0x2e   : > { %p2791_p12 = pnand %p2789_p11, %p3094_p6 }
  0x2f   : > { %p2798_p4 = por %p2797_p2, %p2796_p0 }
  0x30   : > { %p2792_p13 = pneg %p2791_p12 }
  0x31   : > { %2393 = dma.hbm_to_vmem [thread:$0]  (!%p3084_p5), %s3323_s5, 4096, %s3088_s28, [#allocation9], %s2960_s19, %s2960_s19, %s2961_s14  }
  0x32   : > { %p2799_p7 = pnand %p2798_p4, %p2792_p13 }
  0x34   : > { %2802 = shalt.err (!%p2799_p7)
}
  0x35   : > { %2399 = dma.hbm_to_vmem [thread:$0]  (!%p3084_p5), %s3304_s9, 4096, %s3090_s16, [#allocation12], %s2960_s19, %s2960_s19, %s2961_s14  }
  0x36   : > { %s2962_s28 = smov [#allocation7]   ;;  %s2963_s27 = smov [#allocation10]  }
  0x37   : > { %s412_s18 = sshll.u32 %s2962_s28, 4  ;;  %s444_s1 = sshll.u32 %s2963_s27, 4  ;;  %s413_s18 = int_to_ptr.vmem [resolvable:$true] %s412_s18  ;;  %s445_s1 = int_to_ptr.vmem [resolvable:$true] %s444_s1 }
  0x38   : > { %s2814_s24 = scalar_lea.vmem %s413_s18, 4096  ;;  %p2822_p11 = scmp.lt.s32.totalorder %s413_s18, %s413_s18 }
  0x39   : > { %p2815_p8 = scmp.ne.s32.totalorder %s413_s18, %s2814_s24  ;;  %p2823_p12 = scmp.lt.s32.totalorder %s2814_s24, %s2814_s24 }
  0x3b   : > { %p2817_p9 = pnand %p2815_p8, %p3094_p6  ;;  %p2824_p13 = por %p2823_p12, %p2822_p11 }
  0x3d   : > { %p2818_p10 = pneg %p2817_p9 }
  0x3f   : > { %p2825_p0 = pnand %p2824_p13, %p2818_p10 }
  0x41   : > { %2828 = shalt.err (!%p2825_p0)
}
  0x42   : > { %s3324_s3 = sld [smem:[#allocation19_spill]]  ;;  %s2840_s30 = scalar_lea.vmem %s445_s1, 4096 }
  0x43   : > { %p2841_p2 = scmp.ne.s32.totalorder %s445_s1, %s2840_s30  ;;  %p2848_p8 = scmp.lt.s32.totalorder %s445_s1, %s445_s1 }
  0x44   : > { %p2849_p9 = scmp.lt.s32.totalorder %s2840_s30, %s2840_s30 }
  0x45   : > { %p2843_p4 = pnand %p2841_p2, %p3094_p6 }
  0x46   : > { %p2850_p10 = por %p2849_p9, %p2848_p8 }
  0x47   : > { %p2844_p7 = pneg %p2843_p4 }
  0x48   : > { %2390 = dma.hbm_to_vmem [thread:$0]  (!%p3084_p5), %s3324_s3, 4096, %s413_s18, [#allocation6], %s2960_s19, %s2960_s19, %s2961_s14  }
  0x49   : > { %p2851_p11 = pnand %p2850_p10, %p2844_p7 }
  0x4b   : > { %2854 = shalt.err (!%p2851_p11)
}
  0x4c   : > { %s3325_s7 = sld [smem:[#allocation21_spill]]  ;;  %s2964_s18 = smov [#allocation13]  }
  0x4d   : > { %s476_s24 = sshll.u32 %s2964_s18, 4  ;;  %s477_s24 = int_to_ptr.vmem [resolvable:$true] %s476_s24 }
  0x4e   : > { %s2866_s16 = scalar_lea.vmem %s477_s24, 4096  ;;  %p2874_p2 = scmp.lt.s32.totalorder %s477_s24, %s477_s24 }
  0x4f   : > { %p2867_p12 = scmp.ne.s32.totalorder %s477_s24, %s2866_s16  ;;  %p2875_p4 = scmp.lt.s32.totalorder %s2866_s16, %s2866_s16 }
  0x51   : > { %p2869_p13 = pnand %p2867_p12, %p3094_p6  ;;  %p2876_p7 = por %p2875_p4, %p2874_p2 }
  0x52   : > { %2396 = dma.hbm_to_vmem [thread:$0]  (!%p3084_p5), %s3325_s7, 4096, %s445_s1, [#allocation9], %s2960_s19, %s2960_s19, %s2961_s14  }
  0x53   : > { %p2870_p0 = pneg %p2869_p13 }
  0x55   : > { %p2877_p8 = pnand %p2876_p7, %p2870_p0 }
  0x57   : > { %2880 = shalt.err (!%p2877_p8)
}
  0x58   : > { %2402 = dma.hbm_to_vmem [thread:$0]  (!%p3084_p5), %s3306_s11, 4096, %s477_s24, [#allocation12], %s2960_s19, %s2960_s19, %s2961_s14  }
  0x59   : > { %s3169_s29 = sadd.s32 1, %s2955_s23   ;;  %s40_s17 = sadd.s32 1, %s2951_s22 }
  0x5a   : > { %s37_s30 = ssub.s32 %s2955_s23, %s3169_s29  ;;  %p47_p6 = scmp.ne.s32.totalorder %s2951_s22, %s2947_s21 }
  0x5b   : > { %p38_p9 = scmp.eq.s32.totalorder %s37_s30, 0  ;;  %p48_p10 = scmp.eq.s32.totalorder %s2955_s23, 0 }
  0x5c   : > { %p53_p11 = scmp.ne.s32.totalorder %s2947_s21, %s2943_s20  ;;  %p2413_p12 = scmp.lt.s32.totalorder %s2955_s23, 2 }
  0x5d   : > { %s3181_s28 = scalar_select %p38_p9, %s2951_s22, %s40_s17  }
  0x5e   : > { %p49_p13 = por %p48_p10, %p47_p6  ;;  %p3185_p0 = por %p3311_p1, %p53_p11 }
  0x5f   : > { %s499_s18 = sand.u32 1, %s2951_s22   ;;  %s2169_s19 = sshll.u32 %s2955_s23, 7 }
  0x60   : > { %s3326_s27 = scalar_select %p3185_p0, 1, 0 }
  0x61   : > { %s2168_s14 = sshll.u32 %s499_s18, 3  ;;  %s3194_s15 = scalar_lea.hbm %s3295_s0, %s2169_s19 }
  0x62   : > { %s503_s20 = scalar_lea.vmem [#allocation3], %s2168_s14  ;;  %p3196_p5 = pnand %p2413_p12, %p49_p13 }
  0x63   : > { %s510_s1 = sshll.u32 %s503_s20, 4  ;;  %s500_s30 = scalar_lea.sflag [#allocation4], %s499_s18  ;;  %s511_s1 = int_to_ptr.vmem [resolvable:$true] %s510_s1 }
  0x64   : > { %s2881_s3 = scalar_lea.hbm %s3194_s15, 128  ;;  %p2883_p4 = pneg %p3196_p5 }
  0x65   : > { %p2882_p2 = scmp.ne.s32.totalorder %s3194_s15, %s2881_s3  ;;  %s2886_s24 = scalar_lea.hbm %s3295_s0, 256 }
  0x66   : > { %p2887_p6 = scmp.lt.s32.totalorder %s3194_s15, %s3295_s0  ;;  %p2888_p9 = scmp.lt.s32.totalorder %s2886_s24, %s2881_s3 }
  0x67   : > { %p2884_p7 = pnand %p2883_p4, %p2882_p2 }
  0x68   : > { %p2889_p10 = por %p2888_p9, %p2887_p6 }
  0x69   : > { %p2885_p8 = pneg %p2884_p7 }
  0x6b   : > { %p2890_p11 = pnand %p2889_p10, %p2885_p8 }
  0x6d   : > { %2893 = shalt.err (!%p2890_p11)
}
  0x6e   : > { %s2894_s20 = scalar_lea.vmem %s511_s1, 128  ;;  %s2965_s18 = smov [#allocation3]  }
  0x6f   : > { %p2895_p12 = scmp.ne.s32.totalorder %s511_s1, %s2894_s20  ;;  %s2899_s5 = sshll.u32 %s2965_s18, 4  ;;  %s2900_s5 = int_to_ptr.vmem [resolvable:$false] %s2899_s5 }
  0x70   : > { %s2901_s7 = scalar_lea.vmem %s2900_s5, 256  ;;  %p2902_p2 = scmp.lt.s32.totalorder %s511_s1, %s2900_s5 }
  0x71   : > { %p2897_p13 = pnand %p2895_p12, %p2883_p4  ;;  %p2903_p7 = scmp.lt.s32.totalorder %s2901_s7, %s2894_s20 }
  0x73   : > { %p2898_p1 = pneg %p2897_p13  ;;  %p2904_p0 = por %p2903_p7, %p2902_p2 }
  0x75   : > { %p2905_p3 = pnand %p2904_p0, %p2898_p1 }
  0x77   : > { %2908 = shalt.err (!%p2905_p3)
}
  0x78   : > { %2406 = dma.hbm_to_vmem [thread:$0]  (!%p3196_p5), %s3194_s15, 128, %s511_s1, %s500_s30  }
  0x79   : > { %p3328_p8 = scmp.ne.s32.totalorder %s3319_s26, 0 }
  0x7a   : > { %s521_s3 = sand.u32 (!%p3328_p8), 1, %s2947_s21   ;;  %p3329_p4 = scmp.ne.s32.totalorder (!%p3328_p8), %s3326_s27, 0 }
  0x7b   : > { %519 = sbr.rel (%p3328_p8) target bundleno = 1537 (0x601), region = 80  ;;  %s3217_s23 = sshll.u32 (!%p3328_p8), %s521_s3, 3 }
  0x7c   : > { %s522_s19 = scalar_lea.sflag (!%p3328_p8), [#allocation4], %s521_s3  ;;  %s525_s24 = scalar_lea.vmem (!%p3328_p8), [#allocation3], %s3217_s23 }
  0x80   : > { %2926 = dma.done.wait (%p3329_p4), %s522_s19, 128  }
  0x81   : > { %2928 = vsyncadd (%p3329_p4), %s522_s19, 4294967168  ;;  %p3330_p1 = scmp.eq.s32.totalorder %s3071_s25, 0 }
  0x83   : > { %2930 = dma.done.wait (%p3330_p1), [#allocation6], 6144   ;;  %p3331_p3 = pmov %p3330_p1 }
  0x84   : > { %p3332_p0 = pmov %p3330_p1 }
  0x85   : > { %2932 = vsyncadd (%p3331_p3), [#allocation6], 4294961152 }
  0x86   : > { %2934 = dma.done.wait (%p3332_p0), [#allocation9], 8192   ;;  %p3333_p5 = pmov %p3332_p0 }
  0x87   : > { %p3334_p6 = pmov %p3332_p0 }
  0x88   : > { %2936 = vsyncadd (%p3333_p5), [#allocation9], 4294959104 }
  0x89   : > { %2938 = dma.done.wait (%p3334_p6), [#allocation12], 8192   ;;  %p3335_p9 = pmov %p3332_p0 }
  0x8a   : > { %v2966_v1 = vmov 0   ;;  %v2461_v2 = vld [vmem:[#allocation5 + $0x74] ss:$8 sps:$4 sm:$0xff]   ;;  %v2463_v3 = vld [vmem:[#allocation5 + $0x70] ss:$8 sps:$4 sm:$0xff]   ;;  %p595_p10 = scmp.lt.s32.totalorder %s3071_s25, 1 }
  0x8b   : > { %2940 = vsyncadd (%p3335_p9), [#allocation12], 4294959104  ;;  %742 = vmatprep.mubr.bf16.mxu0 %v2966_v1  ;;  %710 = vmatprep.subr.bf16.mxu0 %v2461_v2  ;;  %v2464_v4 = vld [vmem:[#allocation5 + $0x64] ss:$8 sps:$4 sm:$0xff]   ;;  %v2466_v5 = vld [vmem:[#allocation5 + $0x60] ss:$8 sps:$4 sm:$0xff]  }
  0x8c   : > { %711 = vmatpush1.bf16.msra.mxu0 %v2463_v3  ;;  %v2467_v6 = vld [vmem:[#allocation5 + $0x54] ss:$8 sps:$4 sm:$0xff]   ;;  %v2469_v7 = vld [vmem:[#allocation5 + $0x50] ss:$8 sps:$4 sm:$0xff]   ;;  %v2470_v8 = vld [vmem:[#allocation5 + $0x44] ss:$8 sps:$4 sm:$0xff]  }
  0x8d   : > { %712 = vmatprep.subr.bf16.mxu0 %v2464_v4  ;;  %v2472_v9 = vld [vmem:[#allocation5 + $0x40] ss:$8 sps:$4 sm:$0xff]   ;;  %v2473_v10 = vld [vmem:[#allocation5 + $0x34] ss:$8 sps:$4 sm:$0xff]   ;;  %v2487_v12 = vld [vmem:[#allocation7 + $0x70] ss:$8 sps:$4 sm:$0xff]  }
  0x8e   : > { %v2485_v11 = vld [vmem:[#allocation7 + $0x74] ss:$8 sps:$4 sm:$0xff]   ;;  %v2488_v13 = vld [vmem:[#allocation7 + $0x64] ss:$8 sps:$4 sm:$0xff]   ;;  %v2475_v14 = vld [vmem:[#allocation5 + $0x30] ss:$8 sps:$4 sm:$0xff]  }
  0x8f   : > { %961 = vmatprep.subr.bf16.mxu1 %v2485_v11  ;;  %v2490_v15 = vld [vmem:[#allocation7 + $0x60] ss:$8 sps:$4 sm:$0xff]   ;;  %v2491_v16 = vld [vmem:[#allocation7 + $0x54] ss:$8 sps:$4 sm:$0xff]   ;;  %v2476_v17 = vld [vmem:[#allocation5 + $0x24] ss:$8 sps:$4 sm:$0xff]  }
  0x90   : > { %713 = vmatpush1.bf16.msra.mxu0 %v2466_v5  ;;  %962 = vmatpush1.bf16.msra.mxu1 %v2487_v12  ;;  %v2478_v18 = vld [vmem:[#allocation5 + $0x20] ss:$8 sps:$4 sm:$0xff]   ;;  %v2493_v19 = vld [vmem:[#allocation7 + $0x50] ss:$8 sps:$4 sm:$0xff]   ;;  %v2494_v20 = vld [vmem:[#allocation7 + $0x44] ss:$8 sps:$4 sm:$0xff]  }
  0x91   : > { %714 = vmatprep.subr.bf16.mxu0 %v2467_v6  ;;  %963 = vmatprep.subr.bf16.mxu1 %v2488_v13  ;;  %v2479_v21 = vld [vmem:[#allocation5 + $0x14] ss:$8 sps:$4 sm:$0xff]   ;;  %v2481_v22 = vld [vmem:[#allocation5 + $0x10] ss:$8 sps:$4 sm:$0xff]   ;;  %v2496_v23 = vld [vmem:[#allocation7 + $0x40] ss:$8 sps:$4 sm:$0xff]  }
  0x92   : > { %v2497_v24 = vld [vmem:[#allocation7 + $0x34] ss:$8 sps:$4 sm:$0xff]   ;;  %v2482_v25 = vld [vmem:[#allocation5 + $0x4] ss:$8 sps:$4 sm:$0xff]   ;;  %v2484_v26 = vld [vmem:[#allocation5] ss:$8 sps:$4 sm:$0xff]  }
  0x93   : > { %v600_v27 = vld [vmem:[%s525_s24] sm:$0xff]  ;;  %v2500_v29 = vld [vmem:[#allocation7 + $0x24] ss:$8 sps:$4 sm:$0xff]   ;;  %v2502_v30 = vld [vmem:[#allocation7 + $0x20] ss:$8 sps:$4 sm:$0xff]   ;;  %s3342_s25 = smov (!%p595_p10, %s3071_s25), 1 }
  0x94   : > { %715 = vmatpush1.bf16.msra.mxu0 %v2469_v7  ;;  %964 = vmatpush1.bf16.msra.mxu1 %v2490_v15  ;;  %v2499_v28 = vld [vmem:[#allocation7 + $0x30] ss:$8 sps:$4 sm:$0xff]   ;;  %v2503_v31 = vld [vmem:[#allocation7 + $0x14] ss:$8 sps:$4 sm:$0xff]   ;;  %v601_v32 = vpack.c.bf16 %v600_v27, %v600_v27  ;;  %v2506_v34 = vld [vmem:[#allocation7 + $0x4] ss:$8 sps:$4 sm:$0xff]  }
  0x95   : > { %716 = vmatprep.subr.bf16.mxu0 %v2470_v8  ;;  %965 = vmatprep.subr.bf16.mxu1 %v2491_v16  ;;  %v2505_v33 = vld [vmem:[#allocation7 + $0x10] ss:$8 sps:$4 sm:$0xff]   ;;  %v2508_v35 = vld [vmem:[#allocation7] ss:$8 sps:$4 sm:$0xff]   ;;  %v2509_v36 = vld [vmem:[#allocation7 + $0xf4] ss:$8 sps:$4 sm:$0xff]  }
  0x96   : > { %v2511_v37 = vld [vmem:[#allocation7 + $0xf0] ss:$8 sps:$4 sm:$0xff]   ;;  %v2512_v38 = vld [vmem:[#allocation7 + $0xe4] ss:$8 sps:$4 sm:$0xff]   ;;  %v2514_v39 = vld [vmem:[#allocation7 + $0xe0] ss:$8 sps:$4 sm:$0xff]  }
  0x97   : > { %v2515_v40 = vld [vmem:[#allocation7 + $0xd4] ss:$8 sps:$4 sm:$0xff]   ;;  %v2517_v41 = vld [vmem:[#allocation7 + $0xd0] ss:$8 sps:$4 sm:$0xff]   ;;  %v2518_v42 = vld [vmem:[#allocation7 + $0xc4] ss:$8 sps:$4 sm:$0xff]  }
  0x98   : > { %717 = vmatpush1.bf16.msra.mxu0 %v2472_v9  ;;  %966 = vmatpush1.bf16.msra.mxu1 %v2493_v19  ;;  %v2520_v43 = vld [vmem:[#allocation7 + $0xc0] ss:$8 sps:$4 sm:$0xff]   ;;  %v2521_v44 = vld [vmem:[#allocation7 + $0xb4] ss:$8 sps:$4 sm:$0xff]   ;;  %v2523_v45 = vld [vmem:[#allocation7 + $0xb0] ss:$8 sps:$4 sm:$0xff]  }
  0x99   : > { %718 = vmatprep.subr.bf16.mxu0 %v2473_v10  ;;  %967 = vmatprep.subr.bf16.mxu1 %v2494_v20  ;;  %v2524_v46 = vld [vmem:[#allocation7 + $0xa4] ss:$8 sps:$4 sm:$0xff]   ;;  %v2526_v47 = vld [vmem:[#allocation7 + $0xa0] ss:$8 sps:$4 sm:$0xff]   ;;  %v2527_v48 = vld [vmem:[#allocation7 + $0x94] ss:$8 sps:$4 sm:$0xff]  }
  0x9a   : > { %v2529_v49 = vld [vmem:[#allocation7 + $0x90] ss:$8 sps:$4 sm:$0xff]   ;;  %v2530_v50 = vld [vmem:[#allocation7 + $0x84] ss:$8 sps:$4 sm:$0xff]   ;;  %v2532_v51 = vld [vmem:[#allocation7 + $0x80] ss:$8 sps:$4 sm:$0xff]  }
  0x9b   : > { %v2533_v52 = vld [vmem:[#allocation8 + $0x70] ss:$8 sps:$4 sm:$0xff]   ;;  %v2535_v53 = vld [vmem:[#allocation8 + $0x74] ss:$8 sps:$4 sm:$0xff]   ;;  %v2538_v54 = vld [vmem:[#allocation8 + $0x64] ss:$8 sps:$4 sm:$0xff]  }
  0x9c   : > { %719 = vmatpush1.bf16.msra.mxu0 %v2475_v14  ;;  %968 = vmatpush1.bf16.msra.mxu1 %v2496_v23  ;;  %v2536_v55 = vld [vmem:[#allocation8 + $0x60] ss:$8 sps:$4 sm:$0xff]   ;;  %v2541_v56 = vld [vmem:[#allocation8 + $0x54] ss:$8 sps:$4 sm:$0xff]   ;;  %v2539_v57 = vld [vmem:[#allocation8 + $0x50] ss:$8 sps:$4 sm:$0xff]   ;;  %v620_v14 = vlaneseq }
  0x9d   : > { %720 = vmatprep.subr.bf16.mxu0 %v2476_v17  ;;  %969 = vmatprep.subr.bf16.mxu1 %v2497_v24  ;;  %v2544_v58 = vld [vmem:[#allocation8 + $0x44] ss:$8 sps:$4 sm:$0xff]   ;;  %v2542_v59 = vld [vmem:[#allocation8 + $0x40] ss:$8 sps:$4 sm:$0xff]   ;;  %v2547_v60 = vld [vmem:[#allocation8 + $0x34] ss:$8 sps:$4 sm:$0xff]  }
  0x9e   : > { %v2545_v61 = vld [vmem:[#allocation8 + $0x30] ss:$8 sps:$4 sm:$0xff]   ;;  %v2550_v62 = vld [vmem:[#allocation8 + $0x24] ss:$8 sps:$4 sm:$0xff]   ;;  %v2548_v63 = vld [vmem:[#allocation8 + $0x20] ss:$8 sps:$4 sm:$0xff]  }
  0x9f   : > { %v2553_v0 = vld [vmem:[#allocation8 + $0x14] ss:$8 sps:$4 sm:$0xff]   ;;  %v2551_v1 = vld [vmem:[#allocation8 + $0x10] ss:$8 sps:$4 sm:$0xff]   ;;  %v2556_v2 = vld [vmem:[#allocation8 + $0x4] ss:$8 sps:$4 sm:$0xff]  }
  0xa0   : > { %721 = vmatpush1.bf16.msra.mxu0 %v2478_v18  ;;  %970 = vmatpush1.bf16.msra.mxu1 %v2499_v28  ;;  %v2554_v3 = vld [vmem:[#allocation8] ss:$8 sps:$4 sm:$0xff]   ;;  %v2559_v4 = vld [vmem:[#allocation8 + $0xf4] ss:$8 sps:$4 sm:$0xff]   ;;  %v2557_v5 = vld [vmem:[#allocation8 + $0xf0] ss:$8 sps:$4 sm:$0xff]  }
  0xa1   : > { %722 = vmatprep.subr.bf16.mxu0 %v2479_v21  ;;  %971 = vmatprep.subr.bf16.mxu1 %v2500_v29  ;;  %v2562_v6 = vld [vmem:[#allocation8 + $0xe4] ss:$8 sps:$4 sm:$0xff]   ;;  %v2560_v7 = vld [vmem:[#allocation8 + $0xe0] ss:$8 sps:$4 sm:$0xff]   ;;  %v2565_v8 = vld [vmem:[#allocation8 + $0xd4] ss:$8 sps:$4 sm:$0xff]  }
  0xa2   : > { %v2563_v9 = vld [vmem:[#allocation8 + $0xd0] ss:$8 sps:$4 sm:$0xff]   ;;  %v2568_v10 = vld [vmem:[#allocation8 + $0xc4] ss:$8 sps:$4 sm:$0xff]   ;;  %v2566_v11 = vld [vmem:[#allocation8 + $0xc0] ss:$8 sps:$4 sm:$0xff]  }
  0xa3   : > { %v2571_v12 = vld [vmem:[#allocation8 + $0xb4] ss:$8 sps:$4 sm:$0xff]   ;;  %v2569_v13 = vld [vmem:[#allocation8 + $0xb0] ss:$8 sps:$4 sm:$0xff]   ;;  %v621_v15 = vshrl.u32 %v620_v14, 7  ;;  %s2178_s19 = sshll.u32 %s3342_s25, 3 }
  0xa4   : > { %723 = vmatpush1.bf16.msra.mxu0 %v2481_v22  ;;  %972 = vmatpush1.bf16.msra.mxu1 %v2502_v30  ;;  %v618_v17 = vld [vmem:[%s3297_s2] sm:$0x3]  ;;  %s3336_s7 = sld [smem:[#allocation22_spill]]  ;;  %vm2035_vm0 = vcmask 7168  }
  0xa5   : > { %724 = vmatprep.subr.bf16.mxu0 %v2482_v25  ;;  %973 = vmatprep.subr.bf16.mxu1 %v2503_v31  ;;  %v3238_v16 = vsub.s32 0, %v621_v15  ;;  %v3243_v18 = vsub.s32 1, %v621_v15 }
  0xa7   : > { %v623_v19 = vrot.slane %v618_v17, %v3238_v16  ;;  %v627_v20 = vrot.slane %v618_v17, %v3243_v18  ;;  %v2622_v17 = vld [vmem:[#allocation10 + $0xa4] ss:$8 sps:$4 sm:$0xff]  }
  0xa8   : > { %725 = vmatpush1.bf16.msra.mxu0 %v2484_v26  ;;  %974 = vmatpush1.bf16.msra.mxu1 %v2505_v33  ;;  %v2574_v33 = vld [vmem:[#allocation8 + $0xa4] ss:$8 sps:$4 sm:$0xff]  }
  0xa9   : > { %975 = vmatprep.subr.bf16.mxu1 %v2506_v34  ;;  %1212 = vmatprep.subr.bf16.mxu0 %v2535_v53  ;;  %v2572_v34 = vld [vmem:[#allocation8 + $0xa0] ss:$8 sps:$4 sm:$0xff]   ;;  %v2604_v53 = vld [vmem:[#allocation10 + $0x4] ss:$8 sps:$4 sm:$0xff]  }
  0xaa   : > { %s598_s26 = scalar_lea.vmem %s3336_s7, %s2178_s19 }
  0xab   : > { %743 = vmatmul.mubr.bf16.vlgmr.msra.gmra.mxu0 %v601_v32 }
  0xac   : > { %976 = vmatpush1.bf16.msra.mxu1 %v2508_v35  ;;  %1213 = vmatpush1.bf16.msra.mxu0 %v2533_v52  ;;  %v2577_v35 = vld [vmem:[#allocation8 + $0x94] ss:$8 sps:$4 sm:$0xff]   ;;  %v2599_v52 = vld [vmem:[#allocation10 + $0x10] ss:$8 sps:$4 sm:$0xff]  }
  0xad   : > { %977 = vmatprep.subr.bf16.mxu1 %v2509_v36  ;;  %1214 = vmatprep.subr.bf16.mxu0 %v2538_v54  ;;  %v2575_v36 = vld [vmem:[#allocation8 + $0x90] ss:$8 sps:$4 sm:$0xff]   ;;  %v2602_v54 = vld [vmem:[#allocation10] ss:$8 sps:$4 sm:$0xff]  }
  0xb0   : > { %978 = vmatpush2.bf16.msra.mxu1 %v2511_v37  ;;  %1215 = vmatpush1.bf16.msra.mxu0 %v2536_v55  ;;  %v2580_v37 = vld [vmem:[#allocation8 + $0x84] ss:$8 sps:$4 sm:$0xff]   ;;  %v2607_v55 = vld [vmem:[#allocation10 + $0xf4] ss:$8 sps:$4 sm:$0xff]  }
  0xb1   : > { %979 = vmatprep.subr.bf16.mxu1 %v2512_v38  ;;  %1216 = vmatprep.subr.bf16.mxu0 %v2541_v56  ;;  %v2578_v38 = vld [vmem:[#allocation8 + $0x80] ss:$8 sps:$4 sm:$0xff]   ;;  %v2605_v56 = vld [vmem:[#allocation10 + $0xf0] ss:$8 sps:$4 sm:$0xff]  }
  0xb4   : > { %980 = vmatpush2.bf16.msra.mxu1 %v2514_v39  ;;  %1217 = vmatpush1.bf16.msra.mxu0 %v2539_v57  ;;  %v2581_v39 = vld [vmem:[#allocation10 + $0x70] ss:$8 sps:$4 sm:$0xff]   ;;  %v2610_v57 = vld [vmem:[#allocation10 + $0xe4] ss:$8 sps:$4 sm:$0xff]  }
  0xb5   : > { %981 = vmatprep.subr.bf16.mxu1 %v2515_v40  ;;  %1218 = vmatprep.subr.bf16.mxu0 %v2544_v58  ;;  %v2583_v40 = vld [vmem:[#allocation10 + $0x74] ss:$8 sps:$4 sm:$0xff]   ;;  %v2608_v58 = vld [vmem:[#allocation10 + $0xe0] ss:$8 sps:$4 sm:$0xff]  }
  0xb8   : > { %982 = vmatpush2.bf16.msra.mxu1 %v2517_v41  ;;  %1219 = vmatpush1.bf16.msra.mxu0 %v2542_v59  ;;  %v2586_v41 = vld [vmem:[#allocation10 + $0x64] ss:$8 sps:$4 sm:$0xff]   ;;  %v2613_v59 = vld [vmem:[#allocation10 + $0xd4] ss:$8 sps:$4 sm:$0xff]  }
  0xb9   : > { %983 = vmatprep.subr.bf16.mxu1 %v2518_v42  ;;  %1220 = vmatprep.subr.bf16.mxu0 %v2547_v60  ;;  %v2584_v42 = vld [vmem:[#allocation10 + $0x60] ss:$8 sps:$4 sm:$0xff]   ;;  %v2611_v60 = vld [vmem:[#allocation10 + $0xd0] ss:$8 sps:$4 sm:$0xff]  }
  0xbc   : > { %984 = vmatpush2.bf16.msra.mxu1 %v2520_v43  ;;  %1221 = vmatpush1.bf16.msra.mxu0 %v2545_v61  ;;  %v2589_v43 = vld [vmem:[#allocation10 + $0x54] ss:$8 sps:$4 sm:$0xff]   ;;  %v2616_v61 = vld [vmem:[#allocation10 + $0xc4] ss:$8 sps:$4 sm:$0xff]  }
  0xbd   : > { %985 = vmatprep.subr.bf16.mxu1 %v2521_v44  ;;  %1222 = vmatprep.subr.bf16.mxu0 %v2550_v62  ;;  %v2587_v44 = vld [vmem:[#allocation10 + $0x50] ss:$8 sps:$4 sm:$0xff]   ;;  %v2614_v62 = vld [vmem:[#allocation10 + $0xc0] ss:$8 sps:$4 sm:$0xff]  }
  0xc0   : > { %986 = vmatpush2.bf16.msra.mxu1 %v2523_v45  ;;  %1223 = vmatpush1.bf16.msra.mxu0 %v2548_v63  ;;  %v2592_v45 = vld [vmem:[#allocation10 + $0x44] ss:$8 sps:$4 sm:$0xff]   ;;  %v2619_v63 = vld [vmem:[#allocation10 + $0xb4] ss:$8 sps:$4 sm:$0xff]  }
  0xc1   : > { %987 = vmatprep.subr.bf16.mxu1 %v2524_v46  ;;  %1224 = vmatprep.subr.bf16.mxu0 %v2553_v0  ;;  %v2590_v46 = vld [vmem:[#allocation10 + $0x40] ss:$8 sps:$4 sm:$0xff]   ;;  %v2617_v0 = vld [vmem:[#allocation10 + $0xb0] ss:$8 sps:$4 sm:$0xff]  }
  0xc4   : > { %988 = vmatpush2.bf16.msra.mxu1 %v2526_v47  ;;  %1225 = vmatpush1.bf16.msra.mxu0 %v2551_v1  ;;  %v2595_v47 = vld [vmem:[#allocation10 + $0x34] ss:$8 sps:$4 sm:$0xff]   ;;  %v789_v1 = vld [vmem:[%s3299_s4] sm:$0x3] }
  0xc5   : > { %989 = vmatprep.subr.bf16.mxu1 %v2527_v48  ;;  %1226 = vmatprep.subr.bf16.mxu0 %v2556_v2  ;;  %v2593_v48 = vld [vmem:[#allocation10 + $0x30] ss:$8 sps:$4 sm:$0xff]   ;;  %v794_v2 = vrot.slane %v789_v1, %v3238_v16 }
  0xc8   : > { %990 = vmatpush2.bf16.msra.mxu1 %v2529_v49  ;;  %1227 = vmatpush1.bf16.msra.mxu0 %v2554_v3  ;;  %v2598_v49 = vld [vmem:[#allocation10 + $0x24] ss:$8 sps:$4 sm:$0xff]   ;;  %v798_v3 = vrot.slane %v789_v1, %v3243_v18 }
  0xc9   : > { %991 = vmatprep.subr.bf16.mxu1 %v2530_v50  ;;  %1228 = vmatprep.subr.bf16.mxu0 %v2559_v4  ;;  %v2596_v50 = vld [vmem:[#allocation10 + $0x20] ss:$8 sps:$4 sm:$0xff]   ;;  %v2670_v1 = vld [vmem:[#allocation11 + $0xa4] ss:$8 sps:$4 sm:$0xff]  }
  0xcc   : > { %992 = vmatpush2.bf16.msra.mxu1 %v2532_v51  ;;  %1229 = vmatpush2.bf16.msra.mxu0 %v2557_v5  ;;  %v2601_v51 = vld [vmem:[#allocation10 + $0x14] ss:$8 sps:$4 sm:$0xff]  }
  0xcd   : > { %1230 = vmatprep.subr.bf16.mxu0 %v2562_v6  ;;  %1463 = vmatprep.subr.bf16.mxu1 %v2583_v40  ;;  %v2655_v40 = vld [vmem:[#allocation11 + $0xf4] ss:$8 sps:$4 sm:$0xff]  }
  0xd0   : > { %1231 = vmatpush2.bf16.msra.mxu0 %v2560_v7 }
  0xd1   : > { %1232 = vmatprep.subr.bf16.mxu0 %v2565_v8 }
  0xd4   : > { %1233 = vmatpush2.bf16.msra.mxu0 %v2563_v9 }
  0xd5   : > { %1234 = vmatprep.subr.bf16.mxu0 %v2568_v10 }
  0xd8   : > { %1235 = vmatpush2.bf16.msra.mxu0 %v2566_v11 }
  0xd9   : > { %1236 = vmatprep.subr.bf16.mxu0 %v2571_v12 }
  0xdc   : > { %1237 = vmatpush2.bf16.msra.mxu0 %v2569_v13 }
  0xdd   : > { %1238 = vmatprep.subr.bf16.mxu0 %v2574_v33  ;;  %v2641_v33 = vld [vmem:[#allocation11 + $0x30] ss:$8 sps:$4 sm:$0xff]  }
  0xe0   : > { %1239 = vmatpush2.bf16.msra.mxu0 %v2572_v34  ;;  %v2646_v34 = vld [vmem:[#allocation11 + $0x24] ss:$8 sps:$4 sm:$0xff]  }
  0xe1   : > { %1240 = vmatprep.subr.bf16.mxu0 %v2577_v35  ;;  %v2644_v35 = vld [vmem:[#allocation11 + $0x20] ss:$8 sps:$4 sm:$0xff]  }
  0xe4   : > { %1241 = vmatpush2.bf16.msra.mxu0 %v2575_v36  ;;  %v2649_v36 = vld [vmem:[#allocation11 + $0x14] ss:$8 sps:$4 sm:$0xff]  }
  0xe5   : > { %1242 = vmatprep.subr.bf16.mxu0 %v2580_v37  ;;  %v2647_v37 = vld [vmem:[#allocation11 + $0x10] ss:$8 sps:$4 sm:$0xff]  }
  0xe8   : > { %1243 = vmatpush2.bf16.msra.mxu0 %v2578_v38  ;;  %v2652_v38 = vld [vmem:[#allocation11 + $0x4] ss:$8 sps:$4 sm:$0xff]  }
 0x16b   : > { %v744_v21 = vpop.f32.mrf.mxu0 }
 0x16c   : > { %v745_v22 = vadd.f32 %v744_v21, %v623_v19  ;;  %v2620_v19 = vld [vmem:[#allocation10 + $0xa0] ss:$8 sps:$4 sm:$0xff]   ;;  %v2623_v21 = vld [vmem:[#allocation10 + $0x90] ss:$8 sps:$4 sm:$0xff]  }
 0x16d   : > { %v746_v23 = vpop.f32.mrf.mxu0 }
 0x16e   : > { %v751_v24 = vmul.f32 0.01, %v745_v22  ;;  %v747_v25 = vadd.f32 %v746_v23, %v627_v20  ;;  %v2625_v20 = vld [vmem:[#allocation10 + $0x94] ss:$8 sps:$4 sm:$0xff]   ;;  %v2626_v23 = vld [vmem:[#allocation10 + $0x80] ss:$8 sps:$4 sm:$0xff]  }
 0x16f   : > { %v748_v26 = vpop.f32.mrf.mxu0 }
 0x170   : > { %v752_v27 = vmul.f32 0.01, %v747_v25  ;;  %v753_v28 = vmax.f32 %v745_v22, %v751_v24  ;;  %v2628_v22 = vld [vmem:[#allocation10 + $0x84] ss:$8 sps:$4 sm:$0xff]   ;;  %v2629_v24 = vld [vmem:[#allocation11 + $0x70] ss:$8 sps:$4 sm:$0xff]  }
 0x171   : > { %v749_v29 = vpop.f32.mrf.mxu0  ;;  %v2634_v26 = vld [vmem:[#allocation11 + $0x64] ss:$8 sps:$4 sm:$0xff]  }
 0x172   : > { %v754_v30 = vmax.f32 %v747_v25, %v752_v27  ;;  %v755_v32 = vpack.c.bf16 %v753_v28, %v753_v28  ;;  %v2631_v25 = vld [vmem:[#allocation11 + $0x74] ss:$8 sps:$4 sm:$0xff]   ;;  %v2632_v27 = vld [vmem:[#allocation11 + $0x60] ss:$8 sps:$4 sm:$0xff]   ;;  %v2635_v29 = vld [vmem:[#allocation11 + $0x50] ss:$8 sps:$4 sm:$0xff]  }
 0x173   : > { %1714 = vmatprep.subr.bf16.mxu0 %v2631_v25  ;;  %v2637_v28 = vld [vmem:[#allocation11 + $0x54] ss:$8 sps:$4 sm:$0xff]  }
 0x174   : > { %v756_v31 = vpack.c.bf16 %v754_v30, %v754_v30  ;;  %v2640_v30 = vld [vmem:[#allocation11 + $0x44] ss:$8 sps:$4 sm:$0xff]   ;;  %v2703_v25 = vld [vmem:[#allocation13 + $0xf4] ss:$8 sps:$4 sm:$0xff]  }
 0x176   : > { %993 = vmatprep.mubr.bf16.mxu1 %v756_v31  ;;  %v2638_v31 = vld [vmem:[#allocation11 + $0x40] ss:$8 sps:$4 sm:$0xff]  }
 0x177   : > { %994 = vmatmul.mubr.bf16.vlgmr.msra.gmra.mxu1 %v755_v32  ;;  %v2643_v32 = vld [vmem:[#allocation11 + $0x34] ss:$8 sps:$4 sm:$0xff]  }
 0x178   : > { %1464 = vmatpush1.bf16.msra.mxu1 %v2581_v39  ;;  %v2650_v39 = vld [vmem:[#allocation11] ss:$8 sps:$4 sm:$0xff]  }
 0x179   : > { %1465 = vmatprep.subr.bf16.mxu1 %v2586_v41  ;;  %v2653_v41 = vld [vmem:[#allocation11 + $0xf0] ss:$8 sps:$4 sm:$0xff]  }
 0x17c   : > { %1466 = vmatpush1.bf16.msra.mxu1 %v2584_v42  ;;  %v2658_v42 = vld [vmem:[#allocation11 + $0xe4] ss:$8 sps:$4 sm:$0xff]  }
 0x17d   : > { %1467 = vmatprep.subr.bf16.mxu1 %v2589_v43  ;;  %v2656_v43 = vld [vmem:[#allocation11 + $0xe0] ss:$8 sps:$4 sm:$0xff]  }
 0x180   : > { %1468 = vmatpush1.bf16.msra.mxu1 %v2587_v44  ;;  %v2661_v44 = vld [vmem:[#allocation11 + $0xd4] ss:$8 sps:$4 sm:$0xff]  }
 0x181   : > { %1469 = vmatprep.subr.bf16.mxu1 %v2592_v45  ;;  %v2659_v45 = vld [vmem:[#allocation11 + $0xd0] ss:$8 sps:$4 sm:$0xff]  }
 0x184   : > { %1470 = vmatpush1.bf16.msra.mxu1 %v2590_v46  ;;  %v2664_v46 = vld [vmem:[#allocation11 + $0xc4] ss:$8 sps:$4 sm:$0xff]  }
 0x185   : > { %1471 = vmatprep.subr.bf16.mxu1 %v2595_v47  ;;  %v2662_v47 = vld [vmem:[#allocation11 + $0xc0] ss:$8 sps:$4 sm:$0xff]  }
 0x188   : > { %1472 = vmatpush1.bf16.msra.mxu1 %v2593_v48  ;;  %v2667_v48 = vld [vmem:[#allocation11 + $0xb4] ss:$8 sps:$4 sm:$0xff]  }
 0x189   : > { %1473 = vmatprep.subr.bf16.mxu1 %v2598_v49  ;;  %v2665_v49 = vld [vmem:[#allocation11 + $0xb0] ss:$8 sps:$4 sm:$0xff]  }
 0x18c   : > { %1474 = vmatpush1.bf16.msra.mxu1 %v2596_v50  ;;  %v1040_v50 = vld [vmem:[%s3301_s6] sm:$0x3] }
 0x18d   : > { %1475 = vmatprep.subr.bf16.mxu1 %v2601_v51  ;;  %v1045_v51 = vrot.slane %v1040_v50, %v3238_v16 }
 0x190   : > { %1476 = vmatpush1.bf16.msra.mxu1 %v2599_v52  ;;  %v1049_v52 = vrot.slane %v1040_v50, %v3243_v18  ;;  %v2718_v50 = vld [vmem:[#allocation13 + $0xa4] ss:$8 sps:$4 sm:$0xff]  }
 0x191   : > { %1477 = vmatprep.subr.bf16.mxu1 %v2604_v53 }
 0x194   : > { %1478 = vmatpush1.bf16.msra.mxu1 %v2602_v54 }
 0x195   : > { %1479 = vmatprep.subr.bf16.mxu1 %v2607_v55 }
 0x198   : > { %1480 = vmatpush2.bf16.msra.mxu1 %v2605_v56 }
 0x199   : > { %1481 = vmatprep.subr.bf16.mxu1 %v2610_v57 }
 0x19c   : > { %1482 = vmatpush2.bf16.msra.mxu1 %v2608_v58 }
 0x19d   : > { %1483 = vmatprep.subr.bf16.mxu1 %v2613_v59 }
 0x1a0   : > { %1484 = vmatpush2.bf16.msra.mxu1 %v2611_v60 }
 0x1a1   : > { %1485 = vmatprep.subr.bf16.mxu1 %v2616_v61 }
 0x1a4   : > { %1486 = vmatpush2.bf16.msra.mxu1 %v2614_v62 }
 0x1a5   : > { %1487 = vmatprep.subr.bf16.mxu1 %v2619_v63 }
 0x1a8   : > { %1488 = vmatpush2.bf16.msra.mxu1 %v2617_v0 }
 0x1a9   : > { %1489 = vmatprep.subr.bf16.mxu1 %v2622_v17  ;;  %v2689_v17 = vld [vmem:[#allocation13 + $0x30] ss:$8 sps:$4 sm:$0xff]  }
 0x1ac   : > { %1490 = vmatpush2.bf16.msra.mxu1 %v2620_v19  ;;  %v2694_v19 = vld [vmem:[#allocation13 + $0x24] ss:$8 sps:$4 sm:$0xff]  }
 0x1ad   : > { %1491 = vmatprep.subr.bf16.mxu1 %v2625_v20  ;;  %v2692_v20 = vld [vmem:[#allocation13 + $0x20] ss:$8 sps:$4 sm:$0xff]  }
 0x1b0   : > { %1492 = vmatpush2.bf16.msra.mxu1 %v2623_v21  ;;  %v2697_v21 = vld [vmem:[#allocation13 + $0x14] ss:$8 sps:$4 sm:$0xff]  }
 0x1b1   : > { %1493 = vmatprep.subr.bf16.mxu1 %v2628_v22  ;;  %v2695_v22 = vld [vmem:[#allocation13 + $0x10] ss:$8 sps:$4 sm:$0xff]  }
 0x1b4   : > { %1494 = vmatpush2.bf16.msra.mxu1 %v2626_v23  ;;  %v2700_v23 = vld [vmem:[#allocation13 + $0x4] ss:$8 sps:$4 sm:$0xff]  }
 0x237   : > { %v995_v4 = vpop.f32.mrf.mxu1 }
 0x238   : > { %v996_v5 = vadd.f32 %v995_v4, %v794_v2  ;;  %v2668_v2 = vld [vmem:[#allocation11 + $0xa0] ss:$8 sps:$4 sm:$0xff]   ;;  %v2671_v4 = vld [vmem:[#allocation11 + $0x90] ss:$8 sps:$4 sm:$0xff]  }
 0x239   : > { %v997_v6 = vpop.f32.mrf.mxu1 }
 0x23a   : > { %v1002_v7 = vmul.f32 0.01, %v996_v5  ;;  %v998_v8 = vadd.f32 %v997_v6, %v798_v3  ;;  %v2673_v3 = vld [vmem:[#allocation11 + $0x94] ss:$8 sps:$4 sm:$0xff]   ;;  %v2674_v6 = vld [vmem:[#allocation11 + $0x80] ss:$8 sps:$4 sm:$0xff]  }
 0x23b   : > { %v999_v9 = vpop.f32.mrf.mxu1 }
 0x23c   : > { %v1003_v10 = vmul.f32 0.01, %v998_v8  ;;  %v1004_v11 = vmax.f32 %v996_v5, %v1002_v7  ;;  %v2676_v5 = vld [vmem:[#allocation11 + $0x84] ss:$8 sps:$4 sm:$0xff]   ;;  %v2677_v7 = vld [vmem:[#allocation13 + $0x70] ss:$8 sps:$4 sm:$0xff]  }
 0x23d   : > { %v1000_v12 = vpop.f32.mrf.mxu1  ;;  %v2682_v9 = vld [vmem:[#allocation13 + $0x64] ss:$8 sps:$4 sm:$0xff]  }
 0x23e   : > { %v1005_v13 = vmax.f32 %v998_v8, %v1003_v10  ;;  %v1006_v15 = vpack.c.bf16 %v1004_v11, %v1004_v11  ;;  %v2679_v8 = vld [vmem:[#allocation13 + $0x74] ss:$8 sps:$4 sm:$0xff]   ;;  %v2680_v10 = vld [vmem:[#allocation13 + $0x60] ss:$8 sps:$4 sm:$0xff]   ;;  %v2683_v12 = vld [vmem:[#allocation13 + $0x50] ss:$8 sps:$4 sm:$0xff]  }
 0x23f   : > { %1965 = vmatprep.subr.bf16.mxu1 %v2679_v8  ;;  %v2685_v11 = vld [vmem:[#allocation13 + $0x54] ss:$8 sps:$4 sm:$0xff]  }
 0x240   : > { %v1007_v14 = vpack.c.bf16 %v1005_v13, %v1005_v13  ;;  %v2688_v13 = vld [vmem:[#allocation13 + $0x44] ss:$8 sps:$4 sm:$0xff]  }
 0x242   : > { %1244 = vmatprep.mubr.bf16.mxu0 %v1007_v14  ;;  %v2686_v14 = vld [vmem:[#allocation13 + $0x40] ss:$8 sps:$4 sm:$0xff]  }
 0x243   : > { %1245 = vmatmul.mubr.bf16.vlgmr.msra.gmra.mxu0 %v1006_v15  ;;  %v2691_v15 = vld [vmem:[#allocation13 + $0x34] ss:$8 sps:$4 sm:$0xff]  }
 0x244   : > { %1715 = vmatpush1.bf16.msra.mxu0 %v2629_v24  ;;  %v2698_v24 = vld [vmem:[#allocation13] ss:$8 sps:$4 sm:$0xff]  }
 0x245   : > { %1716 = vmatprep.subr.bf16.mxu0 %v2634_v26  ;;  %v2701_v26 = vld [vmem:[#allocation13 + $0xf0] ss:$8 sps:$4 sm:$0xff]  }
 0x248   : > { %1717 = vmatpush1.bf16.msra.mxu0 %v2632_v27  ;;  %v2706_v27 = vld [vmem:[#allocation13 + $0xe4] ss:$8 sps:$4 sm:$0xff]  }
 0x249   : > { %1718 = vmatprep.subr.bf16.mxu0 %v2637_v28  ;;  %v2704_v28 = vld [vmem:[#allocation13 + $0xe0] ss:$8 sps:$4 sm:$0xff]  }
 0x24c   : > { %1719 = vmatpush1.bf16.msra.mxu0 %v2635_v29  ;;  %v2709_v29 = vld [vmem:[#allocation13 + $0xd4] ss:$8 sps:$4 sm:$0xff]  }
 0x24d   : > { %1720 = vmatprep.subr.bf16.mxu0 %v2640_v30  ;;  %v2707_v30 = vld [vmem:[#allocation13 + $0xd0] ss:$8 sps:$4 sm:$0xff]  }
 0x250   : > { %1721 = vmatpush1.bf16.msra.mxu0 %v2638_v31  ;;  %v2712_v31 = vld [vmem:[#allocation13 + $0xc4] ss:$8 sps:$4 sm:$0xff]  }
 0x251   : > { %1722 = vmatprep.subr.bf16.mxu0 %v2643_v32  ;;  %v2710_v32 = vld [vmem:[#allocation13 + $0xc0] ss:$8 sps:$4 sm:$0xff]  }
 0x254   : > { %1723 = vmatpush1.bf16.msra.mxu0 %v2641_v33  ;;  %v2715_v33 = vld [vmem:[#allocation13 + $0xb4] ss:$8 sps:$4 sm:$0xff]  }
 0x255   : > { %1724 = vmatprep.subr.bf16.mxu0 %v2646_v34  ;;  %v2713_v34 = vld [vmem:[#allocation13 + $0xb0] ss:$8 sps:$4 sm:$0xff]  }
 0x258   : > { %1725 = vmatpush1.bf16.msra.mxu0 %v2644_v35  ;;  %v1291_v35 = vld [vmem:[%s3303_s8] sm:$0x3] }
 0x259   : > { %1726 = vmatprep.subr.bf16.mxu0 %v2649_v36  ;;  %v1296_v36 = vrot.slane %v1291_v35, %v3238_v16 }
 0x25c   : > { %1727 = vmatpush1.bf16.msra.mxu0 %v2647_v37  ;;  %v1300_v37 = vrot.slane %v1291_v35, %v3243_v18 }
 0x25d   : > { %1728 = vmatprep.subr.bf16.mxu0 %v2652_v38 }
 0x260   : > { %1729 = vmatpush1.bf16.msra.mxu0 %v2650_v39 }
 0x261   : > { %1730 = vmatprep.subr.bf16.mxu0 %v2655_v40 }
 0x264   : > { %1731 = vmatpush2.bf16.msra.mxu0 %v2653_v41 }
 0x265   : > { %1732 = vmatprep.subr.bf16.mxu0 %v2658_v42 }
 0x268   : > { %1733 = vmatpush2.bf16.msra.mxu0 %v2656_v43 }
 0x269   : > { %1734 = vmatprep.subr.bf16.mxu0 %v2661_v44 }
 0x26c   : > { %1735 = vmatpush2.bf16.msra.mxu0 %v2659_v45 }
 0x26d   : > { %1736 = vmatprep.subr.bf16.mxu0 %v2664_v46 }
 0x270   : > { %1737 = vmatpush2.bf16.msra.mxu0 %v2662_v47 }
 0x271   : > { %1738 = vmatprep.subr.bf16.mxu0 %v2667_v48 }
 0x274   : > { %1739 = vmatpush2.bf16.msra.mxu0 %v2665_v49 }
 0x275   : > { %1740 = vmatprep.subr.bf16.mxu0 %v2670_v1 }
 0x278   : > { %1741 = vmatpush2.bf16.msra.mxu0 %v2668_v2 }
 0x279   : > { %1742 = vmatprep.subr.bf16.mxu0 %v2673_v3 }
 0x27c   : > { %1743 = vmatpush2.bf16.msra.mxu0 %v2671_v4 }
 0x27d   : > { %1744 = vmatprep.subr.bf16.mxu0 %v2676_v5 }
 0x280   : > { %1745 = vmatpush2.bf16.msra.mxu0 %v2674_v6 }
 0x303   : > { %v1246_v53 = vpop.f32.mrf.mxu0 }
 0x304   : > { %v1247_v54 = vadd.f32 %v1246_v53, %v1045_v51  ;;  %v2716_v51 = vld [vmem:[#allocation13 + $0xa0] ss:$8 sps:$4 sm:$0xff]   ;;  %v2719_v53 = vld [vmem:[#allocation13 + $0x90] ss:$8 sps:$4 sm:$0xff]  }
 0x305   : > { %v1248_v55 = vpop.f32.mrf.mxu0 }
 0x306   : > { %v1253_v56 = vmul.f32 0.01, %v1247_v54  ;;  %v1249_v57 = vadd.f32 %v1248_v55, %v1049_v52  ;;  %v2721_v52 = vld [vmem:[#allocation13 + $0x94] ss:$8 sps:$4 sm:$0xff]   ;;  %v2722_v55 = vld [vmem:[#allocation13 + $0x80] ss:$8 sps:$4 sm:$0xff]  }
 0x307   : > { %v1250_v58 = vpop.f32.mrf.mxu0 }
 0x308   : > { %v1254_v59 = vmul.f32 0.01, %v1249_v57  ;;  %v1255_v60 = vmax.f32 %v1247_v54, %v1253_v56  ;;  %v2724_v54 = vld [vmem:[#allocation13 + $0x84] ss:$8 sps:$4 sm:$0xff]  }
 0x309   : > { %v1251_v61 = vpop.f32.mrf.mxu0  ;;  %v1542_v56 = vld [vmem:[%s3305_s10] sm:$0x3] }
 0x30a   : > { %v1256_v62 = vmax.f32 %v1249_v57, %v1254_v59  ;;  %v1257_v0 = vpack.c.bf16 %v1255_v60, %v1255_v60  ;;  %v1547_v57 = vrot.slane %v1542_v56, %v3238_v16  ;;  %v1551_v58 = vrot.slane %v1542_v56, %v3243_v18 }
 0x30c   : > { %v1258_v63 = vpack.c.bf16 %v1256_v62, %v1256_v62 }
 0x30e   : > { %1495 = vmatprep.mubr.bf16.mxu1 %v1258_v63 }
 0x30f   : > { %1496 = vmatmul.mubr.bf16.vlgmr.msra.gmra.mxu1 %v1257_v0 }
 0x310   : > { %1966 = vmatpush1.bf16.msra.mxu1 %v2677_v7  ;;  %v1793_v7 = vld [vmem:[%s3307_s12] sm:$0x3] }
 0x311   : > { %1967 = vmatprep.subr.bf16.mxu1 %v2682_v9  ;;  %v1798_v8 = vrot.slane %v1793_v7, %v3238_v16  ;;  %v1802_v9 = vrot.slane %v1793_v7, %v3243_v18 }
 0x314   : > { %1968 = vmatpush1.bf16.msra.mxu1 %v2680_v10 }
 0x315   : > { %1969 = vmatprep.subr.bf16.mxu1 %v2685_v11 }
 0x318   : > { %1970 = vmatpush1.bf16.msra.mxu1 %v2683_v12 }
 0x319   : > { %1971 = vmatprep.subr.bf16.mxu1 %v2688_v13  ;;  %v2010_v13 = vld [vmem:[%s3308_s13] sm:$0x3] }
 0x31c   : > { %1972 = vmatpush1.bf16.msra.mxu1 %v2686_v14 }
 0x31d   : > { %1973 = vmatprep.subr.bf16.mxu1 %v2691_v15 }
 0x320   : > { %1974 = vmatpush1.bf16.msra.mxu1 %v2689_v17 }
 0x321   : > { %1975 = vmatprep.subr.bf16.mxu1 %v2694_v19 }
 0x324   : > { %1976 = vmatpush1.bf16.msra.mxu1 %v2692_v20 }
 0x325   : > { %1977 = vmatprep.subr.bf16.mxu1 %v2697_v21  ;;  %v2015_v21 = vrot.slane %v2010_v13, %v3238_v16 }
 0x328   : > { %1978 = vmatpush1.bf16.msra.mxu1 %v2695_v22  ;;  %v2019_v22 = vrot.slane %v2010_v13, %v3243_v18 }
 0x329   : > { %1979 = vmatprep.subr.bf16.mxu1 %v2700_v23 }
 0x32c   : > { %1980 = vmatpush1.bf16.msra.mxu1 %v2698_v24 }
 0x32d   : > { %1981 = vmatprep.subr.bf16.mxu1 %v2703_v25 }
 0x330   : > { %1982 = vmatpush2.bf16.msra.mxu1 %v2701_v26 }
 0x331   : > { %1983 = vmatprep.subr.bf16.mxu1 %v2706_v27 }
 0x334   : > { %1984 = vmatpush2.bf16.msra.mxu1 %v2704_v28  ;;  %v2355_v28 = vld [vmem:[#allocation2] ss:$0 sm:$0xff] }
 0x335   : > { %1985 = vmatprep.subr.bf16.mxu1 %v2709_v29 }
 0x338   : > { %1986 = vmatpush2.bf16.msra.mxu1 %v2707_v30 }
 0x339   : > { %1987 = vmatprep.subr.bf16.mxu1 %v2712_v31 }
 0x33c   : > { %1988 = vmatpush2.bf16.msra.mxu1 %v2710_v32 }
 0x33d   : > { %1989 = vmatprep.subr.bf16.mxu1 %v2715_v33 }
 0x340   : > { %1990 = vmatpush2.bf16.msra.mxu1 %v2713_v34 }
 0x341   : > { %1991 = vmatprep.subr.bf16.mxu1 %v2718_v50 }
 0x344   : > { %1992 = vmatpush2.bf16.msra.mxu1 %v2716_v51 }
 0x345   : > { %1993 = vmatprep.subr.bf16.mxu1 %v2721_v52 }
 0x348   : > { %1994 = vmatpush2.bf16.msra.mxu1 %v2719_v53 }
 0x349   : > { %1995 = vmatprep.subr.bf16.mxu1 %v2724_v54 }
 0x34c   : > { %1996 = vmatpush2.bf16.msra.mxu1 %v2722_v55 }
 0x3cf   : > { %v1497_v38 = vpop.f32.mrf.mxu1 }
 0x3d0   : > { %v1498_v39 = vadd.f32 %v1497_v38, %v1296_v36 }
 0x3d1   : > { %v1499_v40 = vpop.f32.mrf.mxu1 }
 0x3d2   : > { %v1504_v41 = vmul.f32 0.01, %v1498_v39  ;;  %v1500_v42 = vadd.f32 %v1499_v40, %v1300_v37 }
 0x3d3   : > { %v1501_v43 = vpop.f32.mrf.mxu1 }
 0x3d4   : > { %v1505_v44 = vmul.f32 0.01, %v1500_v42  ;;  %v1506_v45 = vmax.f32 %v1498_v39, %v1504_v41 }
 0x3d5   : > { %v1502_v46 = vpop.f32.mrf.mxu1 }
 0x3d6   : > { %v1507_v47 = vmax.f32 %v1500_v42, %v1505_v44  ;;  %v1508_v49 = vpack.c.bf16 %v1506_v45, %v1506_v45 }
 0x3d8   : > { %v1509_v48 = vpack.c.bf16 %v1507_v47, %v1507_v47 }
 0x3da   : > { %1746 = vmatprep.mubr.bf16.mxu0 %v1509_v48 }
 0x3db   : > { %1747 = vmatmul.mubr.bf16.vlgmr.msra.gmra.mxu0 %v1508_v49 }
 0x49b   : > { %v1748_v59 = vpop.f32.mrf.mxu0 }
 0x49c   : > { %v1749_v60 = vadd.f32 %v1748_v59, %v1547_v57 }
 0x49d   : > { %v1750_v61 = vpop.f32.mrf.mxu0 }
 0x49e   : > { %v1755_v62 = vmul.f32 0.01, %v1749_v60  ;;  %v1751_v63 = vadd.f32 %v1750_v61, %v1551_v58 }
 0x49f   : > { %v1752_v0 = vpop.f32.mrf.mxu0 }
 0x4a0   : > { %v1756_v1 = vmul.f32 0.01, %v1751_v63  ;;  %v1757_v2 = vmax.f32 %v1749_v60, %v1755_v62 }
 0x4a1   : > { %v1753_v3 = vpop.f32.mrf.mxu0 }
 0x4a2   : > { %v1758_v4 = vmax.f32 %v1751_v63, %v1756_v1  ;;  %v1759_v6 = vpack.c.bf16 %v1757_v2, %v1757_v2 }
 0x4a4   : > { %v1760_v5 = vpack.c.bf16 %v1758_v4, %v1758_v4 }
 0x4a6   : > { %1997 = vmatprep.mubr.bf16.mxu1 %v1760_v5 }
 0x4a7   : > { %1998 = vmatmul.mubr.bf16.vlgmr.msra.gmra.mxu1 %v1759_v6 }
 0x567   : > { %v1999_v10 = vpop.f32.mrf.mxu1 }
 0x568   : > { %v2000_v11 = vadd.f32 %v1999_v10, %v1798_v8 }
 0x569   : > { %v2001_v12 = vpop.f32.mrf.mxu1 }
 0x56a   : > { %v2006_v14 = vmul.f32 0.01, %v2000_v11  ;;  %v2002_v15 = vadd.f32 %v2001_v12, %v1802_v9 }
 0x56b   : > { %v2003_v17 = vpop.f32.mrf.mxu1 }
 0x56c   : > { %v2008_v19 = vmax.f32 %v2000_v11, %v2006_v14  ;;  %v2007_v20 = vmul.f32 0.01, %v2002_v15 }
 0x56d   : > { %v2004_v23 = vpop.f32.mrf.mxu1 }
 0x56e   : > { %v2009_v24 = vmax.f32 %v2002_v15, %v2007_v20  ;;  %v2022_v25 = vmul.f32 %v2015_v21, %v2008_v19 }
 0x570   : > { %v2023_v26 = vmul.f32 %v2019_v22, %v2009_v24 }
 0x572   : > { %v2024_v27 = vadd.f32 %v2023_v26, %v2022_v25 }
 0x574   : > { %2025 = vadd.xlane.f32.xlu0 %v2024_v27 }
 0x5fd   : > { %v2026_v29 = vpop.xlane.xlu0 %2025 }
 0x5fe   : > { %v2034_v30 = vadd.f32 %v2355_v28, %v2026_v29 }
 0x600   : > { %2036 = vst.msk [vmem:[%s598_s26] sm:$0xff] %vm2035_vm0, %v2034_v30 }
 0x601 PF: > { %p30_p11 = scmp.ge.s32.totalorder %s3169_s29, 4   ;;  %s3337_s20 = smov %s2947_s21 }
 0x602   : > { %s3338_s21 = smov %s2951_s22  ;;  %s3339_s22 = smov %s3181_s28 }
 0x603   : > { %s3340_s23 = smov %s3169_s29  ;;  %32 = sbr.rel (!%p30_p11) target bundleno = 12 (0xc), region = 144 }
 0x608   :  { %2056 = vsyncpa [#allocation4], 1 }
 0x609   :  { %2058 = vsyncpa [#allocation4 + $0x1], 1 }
 0x60a   :  { %2059 = vsyncpa [#allocation6], 1 }
 0x60b   :  { %2060 = vsyncpa [#allocation9], 1 }
 0x60c   :  { %2061 = vsyncpa [#allocation12], 1 }

</bundles_post_ra>
